<compile_context>
chip_gen: v7x
topology: tpu7x:2x2x1
jax: 0.10.0
libtpu: 0.0.40
codegen_flags: <defaults>
</compile_context>

<pallas_src>
import functools
import math

import jax
import jax.numpy as jnp
from jax import lax
from jax.experimental import pallas as pl
from jax.experimental.pallas import tpu as pltpu

# TODO(synk): the spec's custom LayerNorm class is not shown; assuming PyTorch-default eps.
EPS = 1e-5


def _layernorm(h, g, b):
    # Two-pass (centered) variance: matches PyTorch and avoids E[x^2]-E[x]^2 cancellation.
    mu = jnp.mean(h, axis=-1, keepdims=True)
    c = h - mu
    var = jnp.mean(c * c, axis=-1, keepdims=True)
    return c * lax.rsqrt(var + EPS) * g + b


def _encoder_kernel(num_heads,
                    x_ref,
                    ln1g, ln1b, wqkv, bqkv, wo, bo,
                    ln2g, ln2b, w1, b1, w2, b2,
                    fng, fnb,
                    out_ref,
                    x_sc, ctx_sc):
    """One grid step = (batch tile, layer l).  x_sc carries the f32 activation across l."""
    l = pl.program_id(1)
    n_layers = pl.num_programs(1)

    @pl.when(l == 0)
    def _():
        x_sc[...] = x_ref[...].astype(jnp.float32)

    Bt, S, D = x_sc.shape
    M = Bt * S
    H = num_heads
    dh = D // H
    scale = 1.0 / math.sqrt(dh)

    x2 = x_sc[...].reshape(M, D)                         # [M, D] f32 layer-resident act.

    # ---- pre-norm + fused QKV projection: one MXU pass with M = Bt*S, N = 3*D ----
    wqkv_v = wqkv[...]
    h = _layernorm(x2, ln1g[...], ln1b[...]).astype(wqkv_v.dtype)
    qkv = jnp.dot(h, wqkv_v, preferred_element_type=jnp.float32) + bqkv[...]   # [M, 3D] f32
    qkv = qkv.reshape(Bt, S, 3 * D)

    # ---- multi-head self-attention (mask=None path) ----
    # Static head loop with the batch-tile dim batched through the einsums; per-head
    # contexts are written into ctx_sc so the output projection below is a single
    # [M, D] @ [D, D] matmul (no per-head Wo slices / VPU accumulation).
    # TODO(synk): for large D / long S, relayout qkv once to a head-major form (avoids the
    # 3*H sub-128 lane slices) and add a flash-style KV tile loop instead of materializing
    # the full [Bt, S, S] score block per head.
    for hd in range(H):
        lo = hd * dh
        qh = qkv[:, :, lo:lo + dh] * scale               # scale folded into Q
        kh = qkv[:, :, D + lo:D + lo + dh]
        vh = qkv[:, :, 2 * D + lo:2 * D + lo + dh]
        s = jnp.einsum('bqd,bkd->bqk', qh, kh, preferred_element_type=jnp.float32)
        s = s - jnp.max(s, axis=-1, keepdims=True)
        p = jnp.exp(s)
        p = p / jnp.sum(p, axis=-1, keepdims=True)       # exact softmax denominator
        ctx_sc[:, :, lo:lo + dh] = jnp.einsum('bqk,bkd->bqd', p, vh,
                                              preferred_element_type=jnp.float32)

    wo_v = wo[...]
    ctx = ctx_sc[...].reshape(M, D).astype(wo_v.dtype)
    attn = jnp.dot(ctx, wo_v, preferred_element_type=jnp.float32) + bo[...]
    x2 = x2 + attn                                       # residual 1

    # ---- pre-norm + feed-forward (Linear -> ReLU -> Linear), M = Bt*S rows ----
    # TODO(synk): tile d_ff (inner grid axis / pltpu.emit_pipeline) when the (D, d_ff)
    # weight blocks are too large to double-buffer in VMEM (v7x's 64 MiB budget).
    w1_v = w1[...]
    w2_v = w2[...]
    h2 = _layernorm(x2, ln2g[...], ln2b[...]).astype(w1_v.dtype)
    ff = jnp.dot(h2, w1_v, preferred_element_type=jnp.float32) + b1[...]
    ff = jnp.maximum(ff, 0.0)                            # ReLU
    ff = jnp.dot(ff.astype(w2_v.dtype), w2_v, preferred_element_type=jnp.float32) + b2[...]
    x2 = x2 + ff                                         # residual 2

    x_sc[...] = x2.reshape(Bt, S, D)                     # carry to next layer

    # ---- epilogue: final LayerNorm fused into the last layer's step ----
    @pl.when(l == n_layers - 1)
    def _():
        y = _layernorm(x2, fng[...], fnb[...]).astype(out_ref.dtype)
        out_ref[...] = y.reshape(Bt, S, D)


_LAYER_PARAM_ORDER = ("ln1_g", "ln1_b", "wqkv", "bqkv", "wo", "bo",
                      "ln2_g", "ln2_b", "w1", "b1", "w2", "b2")


def _scoped_vmem_limit(per_step_bytes):
    """Raise the scoped-VMEM limit above the ~32 MiB default only when actually needed,
    and never request more than the chip's physical VMEM (64 MiB on v7x)."""
    needed = int(per_step_bytes * 1.25)
    if needed <= (32 << 20):
        return None                                      # default scoped limit is plenty
    try:
        cap = int(pltpu.get_tpu_info().vmem_capacity_bytes)
    except Exception:                                    # be conservative if query fails
        cap = 64 << 20
    return min(needed, int(cap * 0.85))                  # headroom for Mosaic scratch


def _pick_batch_tile(B, S, D, d_ff):
    """Largest batch tile whose f32 working set fits a VMEM budget; prefer leaving >= 2
    blocks on the parallel batch axis so both v7x TensorCores get work."""
    def act_bytes(bt):
        m = bt * S
        return 4 * (2 * bt * S * D + m * (4 * D + d_ff) + 2 * bt * S * S)

    budget = 20 << 20
    divisors = [d for d in range(1, B + 1) if B % d == 0]
    fitting = [d for d in divisors if act_bytes(d) <= budget] or [1]
    two_blocks = [d for d in fitting if B // d >= 2]
    return max(two_blocks) if two_blocks else max(fitting)


def encoder_forward(x, stacked_params, final_params, num_heads, batch_tile=None):
    """Full encoder forward (L layers + final LayerNorm) in a single pallas_call."""
    B, S, D = x.shape
    L = stacked_params["wqkv"].shape[0]
    d_ff = stacked_params["w1"].shape[-1]
    bt = batch_tile or _pick_batch_tile(B, S, D, d_ff)
    assert B % bt == 0, "batch tile must divide batch"

    weights = [stacked_params[k] for k in _LAYER_PARAM_ORDER]
    finals = [final_params["g"], final_params["b"]]

    # Advisory cost estimate so XLA schedules surrounding work around the custom call.
    flops = int(2 * B * L * (S * D * (4 * D + 2 * d_ff) + 2 * S * S * D))
    transcendentals = int(B * L * (num_heads * S * S + 2 * S) + B * S)
    weight_bytes = sum(int(w.size) * w.dtype.itemsize for w in weights)
    final_bytes = sum(int(w.size) * w.dtype.itemsize for w in finals)
    act_bytes = int(x.size) * x.dtype.itemsize
    cost = pl.CostEstimate(
        flops=flops, transcendentals=transcendentals,
        bytes_accessed=int(2 * act_bytes + (B // bt) * weight_bytes + final_bytes))

    # Per-step VMEM: double-buffered per-layer weights, double-buffered x/out blocks,
    # resident scratches, and in-kernel temporaries (qkv, ff, per-head scores).
    per_layer_w = weight_bytes // max(L, 1)
    m = bt * S
    temporaries = 4 * (m * (4 * D + d_ff) + 2 * bt * S * S)
    per_step = (2 * per_layer_w
                + 2 * 2 * bt * S * D * x.dtype.itemsize
                + 2 * 4 * bt * S * D
                + temporaries)

    grid_spec = pltpu.PrefetchScalarGridSpec(
        num_scalar_prefetch=0,
        grid=(B // bt, L),                                # layer axis innermost (VMEM carry)
        in_specs=(
            [pl.BlockSpec((bt, S, D), lambda b, l: (b, 0, 0))]                    # activations
            + [pl.BlockSpec((None,) + w.shape[1:], lambda b, l: (l, 0, 0))        # stacked params
               for w in weights]
            + [pl.BlockSpec(f.shape, lambda b, l: (0, 0)) for f in finals]        # final LN
        ),
        out_specs=pl.BlockSpec((bt, S, D), lambda b, l: (b, 0, 0)),
        scratch_shapes=[pltpu.VMEM((bt, S, D), jnp.float32),     # layer-resident activation
                        pltpu.VMEM((bt, S, D), jnp.float32)],    # assembled attention context
    )

    return pl.pallas_call(
        functools.partial(_encoder_kernel, num_heads),
        out_shape=jax.ShapeDtypeStruct((B, S, D), x.dtype),
        grid_spec=grid_spec,
        compiler_params=pltpu.CompilerParams(
            dimension_semantics=("parallel", "arbitrary"),
            vmem_limit_bytes=_scoped_vmem_limit(per_step)),
        cost_estimate=cost,
    )(x, *weights, *finals)


def init_params(key, num_layers, d_model, d_ff, param_dtype=jnp.float32):
    """Per-layer parameters stacked along a leading L axis (wq/wk/wv fused into wqkv).
    For production on v5e/v6e/v7x pass param_dtype=jnp.bfloat16: halves weight DMA and
    doubles MXU throughput; the kernel keeps f32 accumulation and f32 LayerNorm stats."""
    L = num_layers
    k_qkv, k_o, k_1, k_2 = jax.random.split(key, 4)

    def nrm(k, shape):
        return (0.02 * jax.random.normal(k, shape, jnp.float32)).astype(param_dtype)

    ones = lambda s: jnp.ones(s, param_dtype)
    zeros = lambda s: jnp.zeros(s, param_dtype)

    stacked = {
        "ln1_g": ones((L, 1, d_model)), "ln1_b": zeros((L, 1, d_model)),
        "wqkv": nrm(k_qkv, (L, d_model, 3 * d_model)),
        "bqkv": zeros((L, 1, 3 * d_model)),
        "wo": nrm(k_o, (L, d_model, d_model)), "bo": zeros((L, 1, d_model)),
        "ln2_g": ones((L, 1, d_model)), "ln2_b": zeros((L, 1, d_model)),
        "w1": nrm(k_1, (L, d_model, d_ff)), "b1": zeros((L, 1, d_ff)),
        "w2": nrm(k_2, (L, d_ff, d_model)), "b2": zeros((L, 1, d_model)),
    }
    final = {"g": jnp.ones((1, d_model), param_dtype),
             "b": jnp.zeros((1, d_model), param_dtype)}
    return stacked, final


def _reference_forward(x, stacked, final, num_heads):
    """Pure-JAX reference mirroring the PyTorch module (pre-norm MHA + FF, final LN)."""
    B, S, D = x.shape
    L = stacked["wqkv"].shape[0]
    H = num_heads
    dh = D // H

    def ln(h, g, b):
        mu = jnp.mean(h, -1, keepdims=True)
        c = h - mu
        var = jnp.mean(c * c, -1, keepdims=True)
        return c * lax.rsqrt(var + EPS) * g + b

    h = x.astype(jnp.float32)
    for l in range(L):
        a_in = ln(h, stacked["ln1_g"][l], stacked["ln1_b"][l])
        qkv = a_in @ stacked["wqkv"][l].astype(jnp.float32) + stacked["bqkv"][l]
        q, k, v = qkv[..., :D], qkv[..., D:2 * D], qkv[..., 2 * D:]
        q = q.reshape(B, S, H, dh).transpose(0, 2, 1, 3) / math.sqrt(dh)
        k = k.reshape(B, S, H, dh).transpose(0, 2, 1, 3)
        v = v.reshape(B, S, H, dh).transpose(0, 2, 1, 3)
        s = jnp.einsum('bhqd,bhkd->bhqk', q, k)
        p = jax.nn.softmax(s, axis=-1)
        ctx = jnp.einsum('bhqk,bhkd->bhqd', p, v).transpose(0, 2, 1, 3).reshape(B, S, D)
        h = h + ctx @ stacked["wo"][l].astype(jnp.float32) + stacked["bo"][l]
        f_in = ln(h, stacked["ln2_g"][l], stacked["ln2_b"][l])
        ff = jnp.maximum(f_in @ stacked["w1"][l].astype(jnp.float32) + stacked["b1"][l], 0.0)
        ff = ff @ stacked["w2"][l].astype(jnp.float32) + stacked["b2"][l]
        h = h + ff
    return ln(h, final["g"], final["b"])


if __name__ == "__main__":
    # Small shapes consistent with the module: batch=2, seq=8, d_model=32, heads=4, d_ff=64, 2 layers.
    B, S, D, H, DFF, L = 2, 8, 32, 4, 64, 2

    key = jax.random.PRNGKey(0)
    key_params, key_x = jax.random.split(key)
    stacked_params, final_params = init_params(key_params, L, D, DFF)
    x = jax.random.normal(key_x, (B, S, D), jnp.float32)

    out = encoder_forward(x, stacked_params, final_params, H)
    jax.block_until_ready(out)
    assert out.shape == (B, S, D)

    ref = _reference_forward(x, stacked_params, final_params, H)
    assert jnp.allclose(out, ref.astype(out.dtype), atol=2e-3, rtol=2e-3), \
        float(jnp.max(jnp.abs(out - ref)))
    print("KERNEL_OK")
</pallas_src>

<mosaic_0001>
module attributes {stable_mosaic.version = 11 : i64} {
  func.func @_encoder_kernel(%arg0: i32, %arg1: i32, %arg2: memref<1x8x32xf32, #tpu.memory_space<vmem>>, %arg3: memref<1x1x32xf32, #tpu.memory_space<vmem>>, %arg4: memref<1x1x32xf32, #tpu.memory_space<vmem>>, %arg5: memref<1x32x96xf32, #tpu.memory_space<vmem>>, %arg6: memref<1x1x96xf32, #tpu.memory_space<vmem>>, %arg7: memref<1x32x32xf32, #tpu.memory_space<vmem>>, %arg8: memref<1x1x32xf32, #tpu.memory_space<vmem>>, %arg9: memref<1x1x32xf32, #tpu.memory_space<vmem>>, %arg10: memref<1x1x32xf32, #tpu.memory_space<vmem>>, %arg11: memref<1x32x64xf32, #tpu.memory_space<vmem>>, %arg12: memref<1x1x64xf32, #tpu.memory_space<vmem>>, %arg13: memref<1x64x32xf32, #tpu.memory_space<vmem>>, %arg14: memref<1x1x32xf32, #tpu.memory_space<vmem>>, %arg15: memref<1x32xf32, #tpu.memory_space<vmem>>, %arg16: memref<1x32xf32, #tpu.memory_space<vmem>>, %arg17: memref<1x8x32xf32, #tpu.memory_space<vmem>>, %arg18: memref<1x8x32xf32, #tpu.memory_space<vmem>>, %arg19: memref<1x8x32xf32, #tpu.memory_space<vmem>>) attributes {dimension_semantics = [#tpu.dimension_semantics<parallel>, #tpu.dimension_semantics<arbitrary>], iteration_bounds = array<i64: 2, 2>, scalar_prefetch = 0 : i64, scratch_operands = 2 : i64, tpu.core_type = #tpu.core_type<tc>, window_params = [{transform_indices = @transform_0, window_bounds = array<i64: 1, 8, 32>}, {transform_indices = @transform_1, window_bounds = array<i64: 1, 1, 32>}, {transform_indices = @transform_2, window_bounds = array<i64: 1, 1, 32>}, {transform_indices = @transform_3, window_bounds = array<i64: 1, 32, 96>}, {transform_indices = @transform_4, window_bounds = array<i64: 1, 1, 96>}, {transform_indices = @transform_5, window_bounds = array<i64: 1, 32, 32>}, {transform_indices = @transform_6, window_bounds = array<i64: 1, 1, 32>}, {transform_indices = @transform_7, window_bounds = array<i64: 1, 1, 32>}, {transform_indices = @transform_8, window_bounds = array<i64: 1, 1, 32>}, {transform_indices = @transform_9, window_bounds = array<i64: 1, 32, 64>}, {transform_indices = @transform_10, window_bounds = array<i64: 1, 1, 64>}, {transform_indices = @transform_11, window_bounds = array<i64: 1, 64, 32>}, {transform_indices = @transform_12, window_bounds = array<i64: 1, 1, 32>}, {pipeline_mode = #tpu.pipeline_mode<synchronous>, transform_indices = @transform_13, window_bounds = array<i64: 1, 32>}, {pipeline_mode = #tpu.pipeline_mode<synchronous>, transform_indices = @transform_14, window_bounds = array<i64: 1, 32>}, {transform_indices = @transform_15, window_bounds = array<i64: 1, 8, 32>}]} {
    %c0_i32 = arith.constant 0 : i32
    %0 = arith.cmpi eq, %arg1, %c0_i32 : i32
    %1 = arith.extui %0 : i1 to i32
    %c0_i32_0 = arith.constant 0 : i32
    %2 = arith.cmpi ne, %1, %c0_i32_0 : i32
    scf.if %2 {
      %c0_89 = arith.constant 0 : index
      %c0_90 = arith.constant 0 : index
      %c0_91 = arith.constant 0 : index
      %161 = vector.load %arg2[%c0_89, %c0_90, %c0_91] : memref<1x8x32xf32, #tpu.memory_space<vmem>>, vector<1x8x32xf32>
      %c0_92 = arith.constant 0 : index
      %c0_93 = arith.constant 0 : index
      %c0_94 = arith.constant 0 : index
      %162 = vector.load %arg18[%c0_92, %c0_93, %c0_94] : memref<1x8x32xf32, #tpu.memory_space<vmem>>, vector<1x8x32xf32>
      tpu.vector_store %arg18[%c0_92, %c0_93, %c0_94], %161 {strides = array<i32>} : memref<1x8x32xf32, #tpu.memory_space<vmem>>, vector<1x8x32xf32>,
    } else {
    }
    %c0 = arith.constant 0 : index
    %c0_1 = arith.constant 0 : index
    %c0_2 = arith.constant 0 : index
    %3 = vector.load %arg18[%c0, %c0_1, %c0_2] : memref<1x8x32xf32, #tpu.memory_space<vmem>>, vector<1x8x32xf32>
    %4 = vector.shape_cast %3 : vector<1x8x32xf32> to vector<8x32xf32>
    %c0_3 = arith.constant 0 : index
    %c0_4 = arith.constant 0 : index
    %c0_5 = arith.constant 0 : index
    %5 = vector.load %arg5[%c0_3, %c0_4, %c0_5] : memref<1x32x96xf32, #tpu.memory_space<vmem>>, vector<1x32x96xf32>
    %6 = vector.shape_cast %5 : vector<1x32x96xf32> to vector<32x96xf32>
    %c0_6 = arith.constant 0 : index
    %c0_7 = arith.constant 0 : index
    %c0_8 = arith.constant 0 : index
    %7 = vector.load %arg3[%c0_6, %c0_7, %c0_8] : memref<1x1x32xf32, #tpu.memory_space<vmem>>, vector<1x1x32xf32>
    %8 = vector.shape_cast %7 : vector<1x1x32xf32> to vector<1x32xf32>
    %c0_9 = arith.constant 0 : index
    %c0_10 = arith.constant 0 : index
    %c0_11 = arith.constant 0 : index
    %9 = vector.load %arg4[%c0_9, %c0_10, %c0_11] : memref<1x1x32xf32, #tpu.memory_space<vmem>>, vector<1x1x32xf32>
    %10 = vector.shape_cast %9 : vector<1x1x32xf32> to vector<1x32xf32>
    %cst = arith.constant dense<0.000000e+00> : vector<8xf32>
    %11 = vector.multi_reduction <add>, %4, %cst [1] : vector<8x32xf32> to vector<8xf32>
    %12 = vector.shape_cast %11 : vector<8xf32> to vector<8x1xf32>
    %cst_12 = arith.constant 3.200000e+01 : f32
    %13 = vector.broadcast %cst_12 : f32 to vector<8x1xf32>
    %14 = arith.divf %12, %13 : vector<8x1xf32>
    %15 = vector.broadcast %14 : vector<8x1xf32> to vector<8x32xf32>
    %16 = arith.subf %4, %15 : vector<8x32xf32>
    %17 = arith.mulf %16, %16 : vector<8x32xf32>
    %cst_13 = arith.constant dense<0.000000e+00> : vector<8xf32>
    %18 = vector.multi_reduction <add>, %17, %cst_13 [1] : vector<8x32xf32> to vector<8xf32>
    %19 = vector.shape_cast %18 : vector<8xf32> to vector<8x1xf32>
    %cst_14 = arith.constant 3.200000e+01 : f32
    %20 = vector.broadcast %cst_14 : f32 to vector<8x1xf32>
    %21 = arith.divf %19, %20 : vector<8x1xf32>
    %cst_15 = arith.constant 9.99999974E-6 : f32
    %22 = vector.broadcast %cst_15 : f32 to vector<8x1xf32>
    %23 = arith.addf %21, %22 : vector<8x1xf32>
    %24 = math.rsqrt %23 : vector<8x1xf32>
    %25 = vector.broadcast %24 : vector<8x1xf32> to vector<8x32xf32>
    %26 = arith.mulf %16, %25 : vector<8x32xf32>
    %27 = vector.broadcast %8 : vector<1x32xf32> to vector<8x32xf32>
    %28 = arith.mulf %26, %27 : vector<8x32xf32>
    %29 = vector.broadcast %10 : vector<1x32xf32> to vector<8x32xf32>
    %30 = arith.addf %28, %29 : vector<8x32xf32>
    %cst_16 = arith.constant dense<0.000000e+00> : vector<8x96xf32>
    %31 = tpu.matmul %30, %6, %cst_16 {dimension_numbers = #tpu.dot_dimension_numbers<[1], [0], [0], [1], [0, 0, 1, 1], [], []>} : vector<8x32xf32>, vector<32x96xf32>, vector<8x96xf32> -> vector<8x96xf32>
    %c0_17 = arith.constant 0 : index
    %c0_18 = arith.constant 0 : index
    %c0_19 = arith.constant 0 : index
    %32 = vector.load %arg6[%c0_17, %c0_18, %c0_19] : memref<1x1x96xf32, #tpu.memory_space<vmem>>, vector<1x1x96xf32>
    %33 = vector.shape_cast %32 : vector<1x1x96xf32> to vector<1x96xf32>
    %34 = vector.broadcast %33 : vector<1x96xf32> to vector<8x96xf32>
    %35 = arith.addf %31, %34 : vector<8x96xf32>
    %36 = vector.shape_cast %35 : vector<8x96xf32> to vector<1x8x96xf32>
    %37 = vector.extract_strided_slice %36 {offsets = [0, 0, 0], sizes = [1, 8, 8], strides = [1, 1, 1]} : vector<1x8x96xf32> to vector<1x8x8xf32>
    %cst_20 = arith.constant 0.353553385 : f32
    %38 = vector.broadcast %cst_20 : f32 to vector<1x8x8xf32>
    %39 = arith.mulf %37, %38 : vector<1x8x8xf32>
    %40 = vector.extract_strided_slice %36 {offsets = [0, 0, 32], sizes = [1, 8, 8], strides = [1, 1, 1]} : vector<1x8x96xf32> to vector<1x8x8xf32>
    %41 = vector.extract_strided_slice %36 {offsets = [0, 0, 64], sizes = [1, 8, 8], strides = [1, 1, 1]} : vector<1x8x96xf32> to vector<1x8x8xf32>
    "tpu.trace_start"() <{level = 10 : i32, message = "bqd,bkd->bqk"}> : () -> ()
    %cst_21 = arith.constant dense<0.000000e+00> : vector<1x8x8xf32>
    %42 = tpu.matmul %39, %40, %cst_21 {dimension_numbers = #tpu.dot_dimension_numbers<[2], [2], [1], [1], [0, 0, 0, 1, 1, 1], [0], [0]>} : vector<1x8x8xf32>, vector<1x8x8xf32>, vector<1x8x8xf32> -> vector<1x8x8xf32>
    "tpu.trace_stop"() : () -> ()
    %cst_22 = arith.constant dense<0xFF800000> : vector<1x8xf32>
    %43 = vector.multi_reduction <maximumf>, %42, %cst_22 [2] : vector<1x8x8xf32> to vector<1x8xf32>
    %44 = vector.shape_cast %43 : vector<1x8xf32> to vector<1x8x1xf32>
    %45 = vector.broadcast %44 : vector<1x8x1xf32> to vector<1x8x8xf32>
    %46 = arith.subf %42, %45 : vector<1x8x8xf32>
    %47 = math.exp %46 : vector<1x8x8xf32>
    %cst_23 = arith.constant dense<0.000000e+00> : vector<1x8xf32>
    %48 = vector.multi_reduction <add>, %47, %cst_23 [2] : vector<1x8x8xf32> to vector<1x8xf32>
    %49 = vector.shape_cast %48 : vector<1x8xf32> to vector<1x8x1xf32>
    %50 = vector.broadcast %49 : vector<1x8x1xf32> to vector<1x8x8xf32>
    %51 = arith.divf %47, %50 : vector<1x8x8xf32>
    "tpu.trace_start"() <{level = 10 : i32, message = "bqk,bkd->bqd"}> : () -> ()
    %cst_24 = arith.constant dense<0.000000e+00> : vector<1x8x8xf32>
    %52 = tpu.matmul %51, %41, %cst_24 {dimension_numbers = #tpu.dot_dimension_numbers<[2], [1], [1], [2], [0, 0, 0, 1, 1, 2], [0], [0]>} : vector<1x8x8xf32>, vector<1x8x8xf32>, vector<1x8x8xf32> -> vector<1x8x8xf32>
    "tpu.trace_stop"() : () -> ()
    %c0_25 = arith.constant 0 : index
    %c0_26 = arith.constant 0 : index
    %c0_27 = arith.constant 0 : index
    %53 = vector.load %arg19[%c0_25, %c0_26, %c0_27] : memref<1x8x32xf32, #tpu.memory_space<vmem>>, vector<1x8x8xf32>
    tpu.vector_store %arg19[%c0_25, %c0_26, %c0_27], %52 {strides = array<i32>} : memref<1x8x32xf32, #tpu.memory_space<vmem>>, vector<1x8x8xf32>,
    %54 = vector.extract_strided_slice %36 {offsets = [0, 0, 8], sizes = [1, 8, 8], strides = [1, 1, 1]} : vector<1x8x96xf32> to vector<1x8x8xf32>
    %cst_28 = arith.constant 0.353553385 : f32
    %55 = vector.broadcast %cst_28 : f32 to vector<1x8x8xf32>
    %56 = arith.mulf %54, %55 : vector<1x8x8xf32>
    %57 = vector.extract_strided_slice %36 {offsets = [0, 0, 40], sizes = [1, 8, 8], strides = [1, 1, 1]} : vector<1x8x96xf32> to vector<1x8x8xf32>
    %58 = vector.extract_strided_slice %36 {offsets = [0, 0, 72], sizes = [1, 8, 8], strides = [1, 1, 1]} : vector<1x8x96xf32> to vector<1x8x8xf32>
    "tpu.trace_start"() <{level = 10 : i32, message = "bqd,bkd->bqk"}> : () -> ()
    %cst_29 = arith.constant dense<0.000000e+00> : vector<1x8x8xf32>
    %59 = tpu.matmul %56, %57, %cst_29 {dimension_numbers = #tpu.dot_dimension_numbers<[2], [2], [1], [1], [0, 0, 0, 1, 1, 1], [0], [0]>} : vector<1x8x8xf32>, vector<1x8x8xf32>, vector<1x8x8xf32> -> vector<1x8x8xf32>
    "tpu.trace_stop"() : () -> ()
    %cst_30 = arith.constant dense<0xFF800000> : vector<1x8xf32>
    %60 = vector.multi_reduction <maximumf>, %59, %cst_30 [2] : vector<1x8x8xf32> to vector<1x8xf32>
    %61 = vector.shape_cast %60 : vector<1x8xf32> to vector<1x8x1xf32>
    %62 = vector.broadcast %61 : vector<1x8x1xf32> to vector<1x8x8xf32>
    %63 = arith.subf %59, %62 : vector<1x8x8xf32>
    %64 = math.exp %63 : vector<1x8x8xf32>
    %cst_31 = arith.constant dense<0.000000e+00> : vector<1x8xf32>
    %65 = vector.multi_reduction <add>, %64, %cst_31 [2] : vector<1x8x8xf32> to vector<1x8xf32>
    %66 = vector.shape_cast %65 : vector<1x8xf32> to vector<1x8x1xf32>
    %67 = vector.broadcast %66 : vector<1x8x1xf32> to vector<1x8x8xf32>
    %68 = arith.divf %64, %67 : vector<1x8x8xf32>
    "tpu.trace_start"() <{level = 10 : i32, message = "bqk,bkd->bqd"}> : () -> ()
    %cst_32 = arith.constant dense<0.000000e+00> : vector<1x8x8xf32>
    %69 = tpu.matmul %68, %58, %cst_32 {dimension_numbers = #tpu.dot_dimension_numbers<[2], [1], [1], [2], [0, 0, 0, 1, 1, 2], [0], [0]>} : vector<1x8x8xf32>, vector<1x8x8xf32>, vector<1x8x8xf32> -> vector<1x8x8xf32>
    "tpu.trace_stop"() : () -> ()
    %c0_33 = arith.constant 0 : index
    %c0_34 = arith.constant 0 : index
    %c8 = arith.constant 8 : index
    %70 = vector.load %arg19[%c0_33, %c0_34, %c8] : memref<1x8x32xf32, #tpu.memory_space<vmem>>, vector<1x8x8xf32>
    tpu.vector_store %arg19[%c0_33, %c0_34, %c8], %69 {strides = array<i32>} : memref<1x8x32xf32, #tpu.memory_space<vmem>>, vector<1x8x8xf32>,
    %71 = vector.extract_strided_slice %36 {offsets = [0, 0, 16], sizes = [1, 8, 8], strides = [1, 1, 1]} : vector<1x8x96xf32> to vector<1x8x8xf32>
    %cst_35 = arith.constant 0.353553385 : f32
    %72 = vector.broadcast %cst_35 : f32 to vector<1x8x8xf32>
    %73 = arith.mulf %71, %72 : vector<1x8x8xf32>
    %74 = vector.extract_strided_slice %36 {offsets = [0, 0, 48], sizes = [1, 8, 8], strides = [1, 1, 1]} : vector<1x8x96xf32> to vector<1x8x8xf32>
    %75 = vector.extract_strided_slice %36 {offsets = [0, 0, 80], sizes = [1, 8, 8], strides = [1, 1, 1]} : vector<1x8x96xf32> to vector<1x8x8xf32>
    "tpu.trace_start"() <{level = 10 : i32, message = "bqd,bkd->bqk"}> : () -> ()
    %cst_36 = arith.constant dense<0.000000e+00> : vector<1x8x8xf32>
    %76 = tpu.matmul %73, %74, %cst_36 {dimension_numbers = #tpu.dot_dimension_numbers<[2], [2], [1], [1], [0, 0, 0, 1, 1, 1], [0], [0]>} : vector<1x8x8xf32>, vector<1x8x8xf32>, vector<1x8x8xf32> -> vector<1x8x8xf32>
    "tpu.trace_stop"() : () -> ()
    %cst_37 = arith.constant dense<0xFF800000> : vector<1x8xf32>
    %77 = vector.multi_reduction <maximumf>, %76, %cst_37 [2] : vector<1x8x8xf32> to vector<1x8xf32>
    %78 = vector.shape_cast %77 : vector<1x8xf32> to vector<1x8x1xf32>
    %79 = vector.broadcast %78 : vector<1x8x1xf32> to vector<1x8x8xf32>
    %80 = arith.subf %76, %79 : vector<1x8x8xf32>
    %81 = math.exp %80 : vector<1x8x8xf32>
    %cst_38 = arith.constant dense<0.000000e+00> : vector<1x8xf32>
    %82 = vector.multi_reduction <add>, %81, %cst_38 [2] : vector<1x8x8xf32> to vector<1x8xf32>
    %83 = vector.shape_cast %82 : vector<1x8xf32> to vector<1x8x1xf32>
    %84 = vector.broadcast %83 : vector<1x8x1xf32> to vector<1x8x8xf32>
    %85 = arith.divf %81, %84 : vector<1x8x8xf32>
    "tpu.trace_start"() <{level = 10 : i32, message = "bqk,bkd->bqd"}> : () -> ()
    %cst_39 = arith.constant dense<0.000000e+00> : vector<1x8x8xf32>
    %86 = tpu.matmul %85, %75, %cst_39 {dimension_numbers = #tpu.dot_dimension_numbers<[2], [1], [1], [2], [0, 0, 0, 1, 1, 2], [0], [0]>} : vector<1x8x8xf32>, vector<1x8x8xf32>, vector<1x8x8xf32> -> vector<1x8x8xf32>
    "tpu.trace_stop"() : () -> ()
    %c0_40 = arith.constant 0 : index
    %c0_41 = arith.constant 0 : index
    %c16 = arith.constant 16 : index
    %87 = vector.load %arg19[%c0_40, %c0_41, %c16] : memref<1x8x32xf32, #tpu.memory_space<vmem>>, vector<1x8x8xf32>
    tpu.vector_store %arg19[%c0_40, %c0_41, %c16], %86 {strides = array<i32>} : memref<1x8x32xf32, #tpu.memory_space<vmem>>, vector<1x8x8xf32>,
    %88 = vector.extract_strided_slice %36 {offsets = [0, 0, 24], sizes = [1, 8, 8], strides = [1, 1, 1]} : vector<1x8x96xf32> to vector<1x8x8xf32>
    %cst_42 = arith.constant 0.353553385 : f32
    %89 = vector.broadcast %cst_42 : f32 to vector<1x8x8xf32>
    %90 = arith.mulf %88, %89 : vector<1x8x8xf32>
    %91 = vector.extract_strided_slice %36 {offsets = [0, 0, 56], sizes = [1, 8, 8], strides = [1, 1, 1]} : vector<1x8x96xf32> to vector<1x8x8xf32>
    %92 = vector.extract_strided_slice %36 {offsets = [0, 0, 88], sizes = [1, 8, 8], strides = [1, 1, 1]} : vector<1x8x96xf32> to vector<1x8x8xf32>
    "tpu.trace_start"() <{level = 10 : i32, message = "bqd,bkd->bqk"}> : () -> ()
    %cst_43 = arith.constant dense<0.000000e+00> : vector<1x8x8xf32>
    %93 = tpu.matmul %90, %91, %cst_43 {dimension_numbers = #tpu.dot_dimension_numbers<[2], [2], [1], [1], [0, 0, 0, 1, 1, 1], [0], [0]>} : vector<1x8x8xf32>, vector<1x8x8xf32>, vector<1x8x8xf32> -> vector<1x8x8xf32>
    "tpu.trace_stop"() : () -> ()
    %cst_44 = arith.constant dense<0xFF800000> : vector<1x8xf32>
    %94 = vector.multi_reduction <maximumf>, %93, %cst_44 [2] : vector<1x8x8xf32> to vector<1x8xf32>
    %95 = vector.shape_cast %94 : vector<1x8xf32> to vector<1x8x1xf32>
    %96 = vector.broadcast %95 : vector<1x8x1xf32> to vector<1x8x8xf32>
    %97 = arith.subf %93, %96 : vector<1x8x8xf32>
    %98 = math.exp %97 : vector<1x8x8xf32>
    %cst_45 = arith.constant dense<0.000000e+00> : vector<1x8xf32>
    %99 = vector.multi_reduction <add>, %98, %cst_45 [2] : vector<1x8x8xf32> to vector<1x8xf32>
    %100 = vector.shape_cast %99 : vector<1x8xf32> to vector<1x8x1xf32>
    %101 = vector.broadcast %100 : vector<1x8x1xf32> to vector<1x8x8xf32>
    %102 = arith.divf %98, %101 : vector<1x8x8xf32>
    "tpu.trace_start"() <{level = 10 : i32, message = "bqk,bkd->bqd"}> : () -> ()
    %cst_46 = arith.constant dense<0.000000e+00> : vector<1x8x8xf32>
    %103 = tpu.matmul %102, %92, %cst_46 {dimension_numbers = #tpu.dot_dimension_numbers<[2], [1], [1], [2], [0, 0, 0, 1, 1, 2], [0], [0]>} : vector<1x8x8xf32>, vector<1x8x8xf32>, vector<1x8x8xf32> -> vector<1x8x8xf32>
    "tpu.trace_stop"() : () -> ()
    %c0_47 = arith.constant 0 : index
    %c0_48 = arith.constant 0 : index
    %c24 = arith.constant 24 : index
    %104 = vector.load %arg19[%c0_47, %c0_48, %c24] : memref<1x8x32xf32, #tpu.memory_space<vmem>>, vector<1x8x8xf32>
    tpu.vector_store %arg19[%c0_47, %c0_48, %c24], %103 {strides = array<i32>} : memref<1x8x32xf32, #tpu.memory_space<vmem>>, vector<1x8x8xf32>,
    %c0_49 = arith.constant 0 : index
    %c0_50 = arith.constant 0 : index
    %c0_51 = arith.constant 0 : index
    %105 = vector.load %arg7[%c0_49, %c0_50, %c0_51] : memref<1x32x32xf32, #tpu.memory_space<vmem>>, vector<1x32x32xf32>
    %106 = vector.shape_cast %105 : vector<1x32x32xf32> to vector<32x32xf32>
    %c0_52 = arith.constant 0 : index
    %c0_53 = arith.constant 0 : index
    %c0_54 = arith.constant 0 : index
    %107 = vector.load %arg19[%c0_52, %c0_53, %c0_54] : memref<1x8x32xf32, #tpu.memory_space<vmem>>, vector<1x8x32xf32>
    %108 = vector.shape_cast %107 : vector<1x8x32xf32> to vector<8x32xf32>
    %cst_55 = arith.constant dense<0.000000e+00> : vector<8x32xf32>
    %109 = tpu.matmul %108, %106, %cst_55 {dimension_numbers = #tpu.dot_dimension_numbers<[1], [0], [0], [1], [0, 0, 1, 1], [], []>} : vector<8x32xf32>, vector<32x32xf32>, vector<8x32xf32> -> vector<8x32xf32>
    %c0_56 = arith.constant 0 : index
    %c0_57 = arith.constant 0 : index
    %c0_58 = arith.constant 0 : index
    %110 = vector.load %arg8[%c0_56, %c0_57, %c0_58] : memref<1x1x32xf32, #tpu.memory_space<vmem>>, vector<1x1x32xf32>
    %111 = vector.shape_cast %110 : vector<1x1x32xf32> to vector<1x32xf32>
    %112 = vector.broadcast %111 : vector<1x32xf32> to vector<8x32xf32>
    %113 = arith.addf %109, %112 : vector<8x32xf32>
    %114 = arith.addf %4, %113 : vector<8x32xf32>
    %c0_59 = arith.constant 0 : index
    %c0_60 = arith.constant 0 : index
    %c0_61 = arith.constant 0 : index
    %115 = vector.load %arg11[%c0_59, %c0_60, %c0_61] : memref<1x32x64xf32, #tpu.memory_space<vmem>>, vector<1x32x64xf32>
    %116 = vector.shape_cast %115 : vector<1x32x64xf32> to vector<32x64xf32>
    %c0_62 = arith.constant 0 : index
    %c0_63 = arith.constant 0 : index
    %c0_64 = arith.constant 0 : index
    %117 = vector.load %arg13[%c0_62, %c0_63, %c0_64] : memref<1x64x32xf32, #tpu.memory_space<vmem>>, vector<1x64x32xf32>
    %118 = vector.shape_cast %117 : vector<1x64x32xf32> to vector<64x32xf32>
    %c0_65 = arith.constant 0 : index
    %c0_66 = arith.constant 0 : index
    %c0_67 = arith.constant 0 : index
    %119 = vector.load %arg9[%c0_65, %c0_66, %c0_67] : memref<1x1x32xf32, #tpu.memory_space<vmem>>, vector<1x1x32xf32>
    %120 = vector.shape_cast %119 : vector<1x1x32xf32> to vector<1x32xf32>
    %c0_68 = arith.constant 0 : index
    %c0_69 = arith.constant 0 : index
    %c0_70 = arith.constant 0 : index
    %121 = vector.load %arg10[%c0_68, %c0_69, %c0_70] : memref<1x1x32xf32, #tpu.memory_space<vmem>>, vector<1x1x32xf32>
    %122 = vector.shape_cast %121 : vector<1x1x32xf32> to vector<1x32xf32>
    %cst_71 = arith.constant dense<0.000000e+00> : vector<8xf32>
    %123 = vector.multi_reduction <add>, %114, %cst_71 [1] : vector<8x32xf32> to vector<8xf32>
    %124 = vector.shape_cast %123 : vector<8xf32> to vector<8x1xf32>
    %cst_72 = arith.constant 3.200000e+01 : f32
    %125 = vector.broadcast %cst_72 : f32 to vector<8x1xf32>
    %126 = arith.divf %124, %125 : vector<8x1xf32>
    %127 = vector.broadcast %126 : vector<8x1xf32> to vector<8x32xf32>
    %128 = arith.subf %114, %127 : vector<8x32xf32>
    %129 = arith.mulf %128, %128 : vector<8x32xf32>
    %cst_73 = arith.constant dense<0.000000e+00> : vector<8xf32>
    %130 = vector.multi_reduction <add>, %129, %cst_73 [1] : vector<8x32xf32> to vector<8xf32>
    %131 = vector.shape_cast %130 : vector<8xf32> to vector<8x1xf32>
    %cst_74 = arith.constant 3.200000e+01 : f32
    %132 = vector.broadcast %cst_74 : f32 to vector<8x1xf32>
    %133 = arith.divf %131, %132 : vector<8x1xf32>
    %cst_75 = arith.constant 9.99999974E-6 : f32
    %134 = vector.broadcast %cst_75 : f32 to vector<8x1xf32>
    %135 = arith.addf %133, %134 : vector<8x1xf32>
    %136 = math.rsqrt %135 : vector<8x1xf32>
    %137 = vector.broadcast %136 : vector<8x1xf32> to vector<8x32xf32>
    %138 = arith.mulf %128, %137 : vector<8x32xf32>
    %139 = vector.broadcast %120 : vector<1x32xf32> to vector<8x32xf32>
    %140 = arith.mulf %138, %139 : vector<8x32xf32>
    %141 = vector.broadcast %122 : vector<1x32xf32> to vector<8x32xf32>
    %142 = arith.addf %140, %141 : vector<8x32xf32>
    %cst_76 = arith.constant dense<0.000000e+00> : vector<8x64xf32>
    %143 = tpu.matmul %142, %116, %cst_76 {dimension_numbers = #tpu.dot_dimension_numbers<[1], [0], [0], [1], [0, 0, 1, 1], [], []>} : vector<8x32xf32>, vector<32x64xf32>, vector<8x64xf32> -> vector<8x64xf32>
    %c0_77 = arith.constant 0 : index
    %c0_78 = arith.constant 0 : index
    %c0_79 = arith.constant 0 : index
    %144 = vector.load %arg12[%c0_77, %c0_78, %c0_79] : memref<1x1x64xf32, #tpu.memory_space<vmem>>, vector<1x1x64xf32>
    %145 = vector.shape_cast %144 : vector<1x1x64xf32> to vector<1x64xf32>
    %146 = vector.broadcast %145 : vector<1x64xf32> to vector<8x64xf32>
    %147 = arith.addf %143, %146 : vector<8x64xf32>
    %cst_80 = arith.constant 0.000000e+00 : f32
    %148 = vector.broadcast %cst_80 : f32 to vector<8x64xf32>
    %149 = arith.maximumf %147, %148 : vector<8x64xf32>
    %cst_81 = arith.constant dense<0.000000e+00> : vector<8x32xf32>
    %150 = tpu.matmul %149, %118, %cst_81 {dimension_numbers = #tpu.dot_dimension_numbers<[1], [0], [0], [1], [0, 0, 1, 1], [], []>} : vector<8x64xf32>, vector<64x32xf32>, vector<8x32xf32> -> vector<8x32xf32>
    %c0_82 = arith.constant 0 : index
    %c0_83 = arith.constant 0 : index
    %c0_84 = arith.constant 0 : index
    %151 = vector.load %arg14[%c0_82, %c0_83, %c0_84] : memref<1x1x32xf32, #tpu.memory_space<vmem>>, vector<1x1x32xf32>
    %152 = vector.shape_cast %151 : vector<1x1x32xf32> to vector<1x32xf32>
    %153 = vector.broadcast %152 : vector<1x32xf32> to vector<8x32xf32>
    %154 = arith.addf %150, %153 : vector<8x32xf32>
    %155 = arith.addf %114, %154 : vector<8x32xf32>
    %156 = vector.shape_cast %155 : vector<8x32xf32> to vector<1x8x32xf32>
    %c0_85 = arith.constant 0 : index
    %c0_86 = arith.constant 0 : index
    %c0_87 = arith.constant 0 : index
    %157 = vector.load %arg18[%c0_85, %c0_86, %c0_87] : memref<1x8x32xf32, #tpu.memory_space<vmem>>, vector<1x8x32xf32>
    tpu.vector_store %arg18[%c0_85, %c0_86, %c0_87], %156 {strides = array<i32>} : memref<1x8x32xf32, #tpu.memory_space<vmem>>, vector<1x8x32xf32>,
    %c1_i32 = arith.constant 1 : i32
    %158 = arith.cmpi eq, %arg1, %c1_i32 : i32
    %159 = arith.extui %158 : i1 to i32
    %c0_i32_88 = arith.constant 0 : i32
    %160 = arith.cmpi ne, %159, %c0_i32_88 : i32
    scf.if %160 {
      %c0_89 = arith.constant 0 : index
      %c0_90 = arith.constant 0 : index
      %161 = vector.load %arg15[%c0_89, %c0_90] : memref<1x32xf32, #tpu.memory_space<vmem>>, vector<1x32xf32>
      %c0_91 = arith.constant 0 : index
      %c0_92 = arith.constant 0 : index
      %162 = vector.load %arg16[%c0_91, %c0_92] : memref<1x32xf32, #tpu.memory_space<vmem>>, vector<1x32xf32>
      %cst_93 = arith.constant dense<0.000000e+00> : vector<8xf32>
      %163 = vector.multi_reduction <add>, %155, %cst_93 [1] : vector<8x32xf32> to vector<8xf32>
      %164 = vector.shape_cast %163 : vector<8xf32> to vector<8x1xf32>
      %cst_94 = arith.constant 3.200000e+01 : f32
      %165 = vector.broadcast %cst_94 : f32 to vector<8x1xf32>
      %166 = arith.divf %164, %165 : vector<8x1xf32>
      %167 = vector.broadcast %166 : vector<8x1xf32> to vector<8x32xf32>
      %168 = arith.subf %155, %167 : vector<8x32xf32>
      %169 = arith.mulf %168, %168 : vector<8x32xf32>
      %cst_95 = arith.constant dense<0.000000e+00> : vector<8xf32>
      %170 = vector.multi_reduction <add>, %169, %cst_95 [1] : vector<8x32xf32> to vector<8xf32>
      %171 = vector.shape_cast %170 : vector<8xf32> to vector<8x1xf32>
      %cst_96 = arith.constant 3.200000e+01 : f32
      %172 = vector.broadcast %cst_96 : f32 to vector<8x1xf32>
      %173 = arith.divf %171, %172 : vector<8x1xf32>
      %cst_97 = arith.constant 9.99999974E-6 : f32
      %174 = vector.broadcast %cst_97 : f32 to vector<8x1xf32>
      %175 = arith.addf %173, %174 : vector<8x1xf32>
      %176 = math.rsqrt %175 : vector<8x1xf32>
      %177 = vector.broadcast %176 : vector<8x1xf32> to vector<8x32xf32>
      %178 = arith.mulf %168, %177 : vector<8x32xf32>
      %179 = vector.broadcast %161 : vector<1x32xf32> to vector<8x32xf32>
      %180 = arith.mulf %178, %179 : vector<8x32xf32>
      %181 = vector.broadcast %162 : vector<1x32xf32> to vector<8x32xf32>
      %182 = arith.addf %180, %181 : vector<8x32xf32>
      %183 = vector.shape_cast %182 : vector<8x32xf32> to vector<1x8x32xf32>
      %c0_98 = arith.constant 0 : index
      %c0_99 = arith.constant 0 : index
      %c0_100 = arith.constant 0 : index
      %184 = vector.load %arg17[%c0_98, %c0_99, %c0_100] : memref<1x8x32xf32, #tpu.memory_space<vmem>>, vector<1x8x32xf32>
      tpu.vector_store %arg17[%c0_98, %c0_99, %c0_100], %183 {strides = array<i32>} : memref<1x8x32xf32, #tpu.memory_space<vmem>>, vector<1x8x32xf32>,
    } else {
    }
    return
  }
  func.func @transform_0(%arg0: i32, %arg1: i32) -> (i32, i32, i32) {
    %c0_i32 = arith.constant 0 : i32
    %c0_i32_0 = arith.constant 0 : i32
    %c0_i32_1 = arith.constant 0 : i32
    return %arg0, %c0_i32, %c0_i32_0 : i32, i32, i32
  }
  func.func @transform_1(%arg0: i32, %arg1: i32) -> (i32, i32, i32) {
    %c0_i32 = arith.constant 0 : i32
    %c0_i32_0 = arith.constant 0 : i32
    %c0_i32_1 = arith.constant 0 : i32
    return %arg1, %c0_i32, %c0_i32_0 : i32, i32, i32
  }
  func.func @transform_2(%arg0: i32, %arg1: i32) -> (i32, i32, i32) {
    %c0_i32 = arith.constant 0 : i32
    %c0_i32_0 = arith.constant 0 : i32
    %c0_i32_1 = arith.constant 0 : i32
    return %arg1, %c0_i32, %c0_i32_0 : i32, i32, i32
  }
  func.func @transform_3(%arg0: i32, %arg1: i32) -> (i32, i32, i32) {
    %c0_i32 = arith.constant 0 : i32
    %c0_i32_0 = arith.constant 0 : i32
    %c0_i32_1 = arith.constant 0 : i32
    return %arg1, %c0_i32, %c0_i32_0 : i32, i32, i32
  }
  func.func @transform_4(%arg0: i32, %arg1: i32) -> (i32, i32, i32) {
    %c0_i32 = arith.constant 0 : i32
    %c0_i32_0 = arith.constant 0 : i32
    %c0_i32_1 = arith.constant 0 : i32
    return %arg1, %c0_i32, %c0_i32_0 : i32, i32, i32
  }
  func.func @transform_5(%arg0: i32, %arg1: i32) -> (i32, i32, i32) {
    %c0_i32 = arith.constant 0 : i32
    %c0_i32_0 = arith.constant 0 : i32
    %c0_i32_1 = arith.constant 0 : i32
    return %arg1, %c0_i32, %c0_i32_0 : i32, i32, i32
  }
  func.func @transform_6(%arg0: i32, %arg1: i32) -> (i32, i32, i32) {
    %c0_i32 = arith.constant 0 : i32
    %c0_i32_0 = arith.constant 0 : i32
    %c0_i32_1 = arith.constant 0 : i32
    return %arg1, %c0_i32, %c0_i32_0 : i32, i32, i32
  }
  func.func @transform_7(%arg0: i32, %arg1: i32) -> (i32, i32, i32) {
    %c0_i32 = arith.constant 0 : i32
    %c0_i32_0 = arith.constant 0 : i32
    %c0_i32_1 = arith.constant 0 : i32
    return %arg1, %c0_i32, %c0_i32_0 : i32, i32, i32
  }
  func.func @transform_8(%arg0: i32, %arg1: i32) -> (i32, i32, i32) {
    %c0_i32 = arith.constant 0 : i32
    %c0_i32_0 = arith.constant 0 : i32
    %c0_i32_1 = arith.constant 0 : i32
    return %arg1, %c0_i32, %c0_i32_0 : i32, i32, i32
  }
  func.func @transform_9(%arg0: i32, %arg1: i32) -> (i32, i32, i32) {
    %c0_i32 = arith.constant 0 : i32
    %c0_i32_0 = arith.constant 0 : i32
    %c0_i32_1 = arith.constant 0 : i32
    return %arg1, %c0_i32, %c0_i32_0 : i32, i32, i32
  }
  func.func @transform_10(%arg0: i32, %arg1: i32) -> (i32, i32, i32) {
    %c0_i32 = arith.constant 0 : i32
    %c0_i32_0 = arith.constant 0 : i32
    %c0_i32_1 = arith.constant 0 : i32
    return %arg1, %c0_i32, %c0_i32_0 : i32, i32, i32
  }
  func.func @transform_11(%arg0: i32, %arg1: i32) -> (i32, i32, i32) {
    %c0_i32 = arith.constant 0 : i32
    %c0_i32_0 = arith.constant 0 : i32
    %c0_i32_1 = arith.constant 0 : i32
    return %arg1, %c0_i32, %c0_i32_0 : i32, i32, i32
  }
  func.func @transform_12(%arg0: i32, %arg1: i32) -> (i32, i32, i32) {
    %c0_i32 = arith.constant 0 : i32
    %c0_i32_0 = arith.constant 0 : i32
    %c0_i32_1 = arith.constant 0 : i32
    return %arg1, %c0_i32, %c0_i32_0 : i32, i32, i32
  }
  func.func @transform_13(%arg0: i32, %arg1: i32) -> (i32, i32) {
    %c0_i32 = arith.constant 0 : i32
    %c0_i32_0 = arith.constant 0 : i32
    %c0_i32_1 = arith.constant 0 : i32
    return %c0_i32, %c0_i32_0 : i32, i32
  }
  func.func @transform_14(%arg0: i32, %arg1: i32) -> (i32, i32) {
    %c0_i32 = arith.constant 0 : i32
    %c0_i32_0 = arith.constant 0 : i32
    %c0_i32_1 = arith.constant 0 : i32
    return %c0_i32, %c0_i32_0 : i32, i32
  }
  func.func @transform_15(%arg0: i32, %arg1: i32) -> (i32, i32, i32) {
    %c0_i32 = arith.constant 0 : i32
    %c0_i32_0 = arith.constant 0 : i32
    %c0_i32_1 = arith.constant 0 : i32
    return %arg0, %c0_i32, %c0_i32_0 : i32, i32, i32
  }
}

</mosaic_0001>

<bundles_post_ra>
// kernel: tpu_custom_call.1
= control target key start
LH: loop header
LB: loop body
LE: loop exit
PB: predicated region body
PF: predicated region fallthrough
CT: control target
= control target key end

     0   :  { %s3023_s0 = inlined_call_operand.hbm [shape: f32[2,8,32], index: 0, kind: input, shape index: {}]   ;;  %s3024_s1 = inlined_call_operand.vmem [shape: f32[2,1,32], index: 1, kind: input, shape index: {}]   ;;  %s3025_s2 = inlined_call_operand.vmem [shape: f32[2,1,32], index: 2, kind: input, shape index: {}]   ;;  %s3026_s3 = inlined_call_operand.vmem [shape: f32[2,32,96], index: 3, kind: input, shape index: {}]   ;;  %s3027_s4 = inlined_call_operand.vmem [shape: f32[2,1,96], index: 4, kind: input, shape index: {}]   ;;  %s3028_s5 = inlined_call_operand.vmem [shape: f32[2,32,32], index: 5, kind: input, shape index: {}]   ;;  %s3029_s6 = inlined_call_operand.vmem [shape: f32[2,1,32], index: 6, kind: input, shape index: {}]   ;;  %s3030_s7 = inlined_call_operand.vmem [shape: f32[2,1,32], index: 7, kind: input, shape index: {}]   ;;  %s3031_s8 = inlined_call_operand.vmem [shape: f32[2,1,32], index: 8, kind: input, shape index: {}]   ;;  %s3032_s9 = inlined_call_operand.vmem [shape: f32[2,32,64], index: 9, kind: input, shape index: {}]   ;;  %s3033_s10 = inlined_call_operand.vmem [shape: f32[2,1,64], index: 10, kind: input, shape index: {}]   ;;  %s3034_s11 = inlined_call_operand.vmem [shape: f32[2,64,32], index: 11, kind: input, shape index: {}]   ;;  %s3035_s12 = inlined_call_operand.vmem [shape: f32[2,1,32], index: 12, kind: input, shape index: {}]   ;;  %s3036_s13 = inlined_call_operand.vmem [shape: f32[1,32], index: 13, kind: input, shape index: {}]   ;;  %s3037_s14 = inlined_call_operand.vmem [shape: f32[1,32], index: 14, kind: input, shape index: {}]   ;;  %s3038_s15 = inlined_call_operand.hbm [shape: f32[2,8,32], index: 15, kind: output, shape index: {}]  }
   0x1   :  { %3054 = sst [smem:[#allocation24_spill]] %s3023_s0 }
   0x2   :  { %3055 = sst [smem:[#allocation25_spill]] %s3026_s3 }
   0x3   :  { %3056 = sst [smem:[#allocation26_spill]] %s3028_s5 }
   0x4   :  { %3057 = sst [smem:[#allocation27_spill]] %s3035_s12 }
   0x5   :  { %3058 = sst [smem:[#allocation28_spill]] %s3036_s13 }
   0x6   :  { %3059 = sst [smem:[#allocation29_spill]] %s3037_s14 }
   0x7   :  { %3060 = sst [smem:[#allocation30_spill]] %s3038_s15 }
   0x8   :  { %20 = vsyncpa [#allocation5], 0 }
   0x9   :  { %22 = vsyncpa [#allocation5 + $0x1], 0 }
   0xa   :  { %23 = vsyncpa [#allocation6], 0 }
   0xb   :  { %25 = vsyncpa [#allocation6 + $0x1], 0  ;;  %s2619_s18 = smov 0   ;;  %s2621_s19 = smov 0  }
   0xc   :  { %s2623_s20 = smov 0   ;;  %s2625_s21 = smov 0  }
   0xd   :  { %s2627_s22 = smov 0   ;;  %s2629_s23 = smov 0  }
   0xe   :  { %s2631_s24 = smov 0   ;;  %s2633_s25 = smov 0  }
   0xf LB: > { %3061 = sst [smem:[#allocation10_spill]] %s2490_s18  ;;  %s2058_s26 = sadd.s32 4294967295, %s2518_s25   ;;  %s2518_s25 = sphi %s2633_s25, %s31_s25   ;;  %s2514_s24 = sphi %s2631_s24, %s3110_s24   ;;  %s2510_s23 = sphi %s2629_s23, %s3109_s23   ;;  %s2506_s22 = sphi %s2627_s22, %s3108_s22   ;;  %s2502_s21 = sphi %s2625_s21, %s3107_s21   ;;  %s2498_s20 = sphi %s2623_s20, %s3106_s20   ;;  %s2494_s19 = sphi %s2621_s19, %s3105_s19   ;;  %s2490_s18 = sphi %s2619_s18, %s3104_s18  }
  0x10   : > { %3062 = sst [smem:[#allocation11_spill]] %s2494_s19  ;;  %s2059_s27 = sadd.s32 4294967294, %s2518_s25  }
  0x11   : > { %3063 = sst [smem:[#allocation12_spill]] %s2498_s20  ;;  %s40_s28 = sadd.s32 1, %s2510_s23 }
  0x12   : > { %3064 = sst [smem:[#allocation13_spill]] %s2506_s22  ;;  %s43_s29 = sadd.s32 1, %s2514_s24 }
  0x13   : > { %3065 = sst [smem:[#allocation14_spill]] %s2510_s23  ;;  %p41_p0 = scmp.ge.s32.totalorder %s40_s28, 2 }
  0x14   : > { %3066 = sst [smem:[#allocation15_spill]] %s2514_s24  ;;  %s50_s30 = sadd.s32 1, %s2498_s20 }
  0x15   : > { %3067 = sst [smem:[#allocation16_spill]] %s2518_s25  ;;  %p57_p1 = scmp.ne.s32.totalorder %s2498_s20, %s2494_s19 }
  0x16   : > { %p58_p2 = scmp.eq.s32.totalorder %s2518_s25, 0  ;;  %s3112_s28 = smov (%p41_p0, %s40_s28), 0 }
  0x17   : > { %3068 = sst [smem:[#allocation17_spill]] %s3112_s28  ;;  %s3114_s29 = smov (!%p41_p0, %s43_s29), %s2514_s24 }
  0x18   : > { %p2670_p3 = por %p58_p2, %p57_p1  ;;  %p63_p4 = scmp.ne.s32.totalorder %s2494_s19, %s2490_s18 }
  0x19   : > { %p45_p5 = scmp.ge.s32.totalorder %s3114_s29, 2  ;;  %p64_p6 = scmp.eq.s32.totalorder %s2058_s26, 0 }
  0x1a   : > { %p441_p7 = scmp.eq.s32.totalorder %s2058_s26, 3  ;;  %p447_p8 = scmp.eq.s32.totalorder %s2059_s27, 3 }
  0x1b   : > { %s3116_s29 = smov (%p45_p5, %s3114_s29), 0  ;;  %p2678_p9 = por %p64_p6, %p63_p4 }
  0x1c   : > { %3070 = sst [smem:[#allocation18_spill]] %s3116_s29  ;;  %p2682_p10 = por %p441_p7, %p57_p1 }
  0x1d   : > { %s47_s23 = ssub.s32 %s2514_s24, %s3116_s29  ;;  %p2688_p11 = por %p447_p8, %p63_p4 }
  0x1e   : > { %s3072_s28 = scalar_select %p2682_p10, 1, 0 }
  0x1f   : > { %s3074_s18 = scalar_select %p2688_p11, 1, 0 }
  0x20   : > { %3073 = sst [smem:[#allocation19_spill]] %s3072_s28  ;;  %p48_p12 = scmp.eq.s32.totalorder %s47_s23, 0 }
  0x21   : > { %3075 = sst [smem:[#allocation20_spill]] %s3074_s18  ;;  %p2285_p13 = scmp.lt.s32.totalorder %s2518_s25, 4 }
  0x22   : > { %s473_s26 = sand.u32 1, %s2498_s20   ;;  %s2063_s22 = sshll.u32 %s2514_s24, 7 }
  0x23   : > { %s2695_s27 = scalar_select %p48_p12, %s2498_s20, %s50_s30  }
  0x24   : > { %s2062_s15 = sshll.u32 %s473_s26, 3  ;;  %s3077_s0 = sld [smem:[#allocation24_spill]] }
  0x25   : > { %3076 = sst [smem:[#allocation21_spill]] %s2695_s27  ;;  %s477_s29 = scalar_lea.vmem [#allocation4], %s2062_s15 }
  0x26   : > { %s484_s28 = sshll.u32 %s477_s29, 4  ;;  %p2707_p0 = pnand %p2285_p13, %p2670_p3  ;;  %s2703_s28 = int_to_ptr.vmem [resolvable:$true] %s484_s28 }
  0x27   : > { %s474_s13 = scalar_lea.sflag [#allocation5], %s473_s26 }
  0x28   : > { %p2392_p5 = pneg %p2707_p0 }
  0x2a   : > { %s2701_s12 = scalar_lea.hbm %s3077_s0, %s2063_s22  ;;  %s2395_s29 = scalar_lea.hbm %s3077_s0, 256 }
  0x2b   : > { %s2390_s14 = scalar_lea.hbm %s2701_s12, 128  ;;  %p2396_p3 = scmp.lt.u32.totalorder %s2701_s12, %s3077_s0 }
  0x2c   : > { %p2391_p4 = scmp.ne.s32.totalorder %s2701_s12, %s2390_s14  ;;  %p2397_p8 = scmp.lt.u32.totalorder %s2395_s29, %s2390_s14 }
  0x2d   : > { %p2399_p13 = scmp.lt.u32.totalorder %s2390_s14, %s2701_s12 }
  0x2e   : > { %p2393_p6 = pnand %p2392_p5, %p2391_p4  ;;  %p2398_p12 = por %p2397_p8, %p2396_p3 }
  0x30   : > { %p2394_p7 = pneg %p2393_p6  ;;  %p2400_p1 = por %p2399_p13, %p2398_p12 }
  0x32   : > { %p2401_p2 = pnand %p2400_p1, %p2394_p7 }
  0x34   : > { %2404 = shalt.err (!%p2401_p2)
}
  0x35   : > { %s2405_s26 = scalar_lea.vmem %s2703_s28, 128  ;;  %s2520_s15 = smov [#allocation4]  }
  0x36   : > { %p2406_p4 = scmp.ne.s32.totalorder %s2703_s28, %s2405_s26  ;;  %s2410_s22 = sshll.u32 %s2520_s15, 4  ;;  %s2411_s22 = int_to_ptr.vmem [resolvable:$false] %s2410_s22 }
  0x37   : > { %s2412_s30 = scalar_lea.vmem %s2411_s22, 256  ;;  %p2413_p10 = scmp.lt.s32.totalorder %s2703_s28, %s2411_s22 }
  0x38   : > { %p2408_p6 = pnand %p2406_p4, %p2392_p5  ;;  %p2414_p3 = scmp.lt.s32.totalorder %s2412_s30, %s2405_s26 }
  0x3a   : > { %p2409_p11 = pneg %p2408_p6  ;;  %p2415_p8 = por %p2414_p3, %p2413_p10 }
  0x3c   : > { %p2416_p12 = pnand %p2415_p8, %p2409_p11 }
  0x3e   : > { %2419 = shalt.err (!%p2416_p12)
}
  0x3f   : > { %2280 = dma.hbm_to_vmem [thread:$0]  (!%p2707_p0), %s2701_s12, 128, %s2703_s28, %s474_s13  }
  0x40   : > { %p3079_p1 = scmp.lt.s32.totalorder %s2518_s25, 5  ;;  %p3080_p2 = scmp.ge.s32.totalorder %s2518_s25, 1 }
  0x42   : > { %p570_p5 = pnand %p3080_p2, %p3079_p1 }
  0x44   : > { %573 = sbr.rel (%p570_p5) target bundleno = 2918 (0xb66), region = 80 }
  0x4b   : > { %s2743_s14 = sand.u32 1, %s2494_s19  }
  0x4c   : > { %3081 = sst [smem:[#allocation22_spill]] %s2743_s14  ;;  %s2065_s29 = sshll.u32 %s2743_s14, 3 }
  0x4d   : > { %s576_s16 = scalar_lea.sflag [#allocation5], %s2743_s14  ;;  %s579_s26 = scalar_lea.vmem [#allocation4], %s2065_s29 }
  0x4e   : > { %2481 = dma.done.wait (%p2678_p9), %s576_s16, 128  }
  0x4f   : > { %2483 = vsyncadd (%p2678_p9), %s576_s16, 4294967168  ;;  %p670_p10 = scmp.lt.s32.totalorder %s2502_s21, 1  ;;  %s3082_s3 = sld [smem:[#allocation25_spill]] }
  0x50   : > { %s3083_s5 = sld [smem:[#allocation26_spill]]  ;;  %s3085_s14 = sld [smem:[#allocation27_spill]] }
  0x51   : > { %s2753_s12 = scalar_select %p670_p10, %s2502_s21, 1 }
  0x52   : > { %s2809_s16 = scalar_lea.vmem [#allocation7], %s2065_s29  ;;  %p2075_p9 = scmp.ne.s32.totalorder %s2502_s21, 0 }
  0x53   : > { %s2107_s30 = sshll.u32 %s2753_s12, 5  ;;  %s697_s24 = scalar_lea.vmem %s3031_s8, %s2753_s12  ;;  %v718_v0 = vld [vmem:[%s579_s26] sm:$0xff] (!%p2075_p9)  ;;  %vm719_vm0 = vcmask (!%p2075_p9), 261120  }
  0x54   : > { %717 = sbr.rel (%p2075_p9) target bundleno = 91 (0x5b), region = 88  ;;  %720 = vst.msk [vmem:[#allocation2] sm:$0xff] (!%p2075_p9), %vm719_vm0, %v718_v0 }
  0x55   : > { %s2771_s27 = scalar_lea.vmem %s3082_s3, %s2107_s30  ;;  %s2793_s3 = scalar_lea.vmem %s3032_s9, %s2107_s30 }
  0x56   : > { %s2776_s18 = scalar_lea.vmem %s3083_s5, %s2107_s30  ;;  %s705_s5 = scalar_lea.vmem %s3033_s10, %s2753_s12 }
  0x57   : > { %3084 = sst [smem:[#allocation23_spill]] %s2776_s18  ;;  %s2110_s18 = sshll.u32 %s2753_s12, 6 }
  0x58   : > { %s2803_s13 = scalar_lea.vmem %s3034_s11, %s2110_s18  ;;  %s713_s0 = scalar_lea.vmem %s3085_s14, %s2753_s12 }
  0x5b PF: > { %v2812_v1 = vld [vmem:[#allocation2] sm:$0xff]  ;;  %vm728_vm1 = vcmask 261120   ;;  %v723_v9 = vld [vmem:[%s2771_s27 + $0x8] sm:$0xff]  ;;  %v724_v10 = vld [vmem:[%s2771_s27 + $0x10] sm:$0xff]  ;;  %v2521_v11 = vmov 0.0|0.0   ;;  %vm2522_vm2 = vmmov 0   ;;  %s3086_s14 = scalar_lea.vmem %s3024_s1, %s2753_s12  ;;  %s3087_s30 = scalar_lea.vmem %s3025_s2, %s2753_s12 }
  0x5c   : > { %v729_v2 = vsel %vm728_vm1, %v2812_v1, 0.0  ;;  %v722_v8 = vld [vmem:[%s2771_s27] sm:$0xff]  ;;  %2243 = vmatprep.subr.bf16.mxu1 %v2521_v11  ;;  %v725_v13 = vld [vmem:[%s2771_s27 + $0x18] sm:$0xff]  ;;  %v2523_v14 = vmov 0.0   ;;  %s3088_s19 = scalar_lea.vmem %s3027_s4, %s2753_s12  ;;  %s2524_s20 = smov 96   ;;  %vm841_vm3 = vcmask 64512  }
  0x5d   : > { %730 = vadd.xlane.f32.xlu0 %v729_v2  ;;  %v2244_v12 = vpack.c.bf16 %v723_v9, %v722_v8  ;;  %2159 = vmatprep.mubr.msk.f32.mxu1 %vm2522_vm2, %v2523_v14  ;;  %v2247_v15 = vpack.c.bf16 %v725_v13, %v724_v10  ;;  %v2076_v20 = vld [vmem:[%s3086_s14] ss:$0 sm:$0xff]  ;;  %s2525_s25 = smov 120   ;;  %s2526_s17 = smov 88   ;;  %vm1174_vm4 = vcmask 130112   ;;  %vm1345_vm5 = vcmask 195712  }
  0x5e   : > { %2172 = vmatprep.subr.mxu0 %v2523_v14  ;;  %2174 = vmatprep.mubr.msk.f32.mxu0 %vm2522_vm2, %v2523_v14  ;;  %v2077_v22 = vld [vmem:[%s3087_s30] ss:$0 sm:$0xff]  ;;  %s2527_s22 = smov 80   ;;  %s2528_s15 = smov 72   ;;  %vm1516_vm6 = vcmask 261312   ;;  %vm1733_vm7 = vcmask 523264  }
  0x5f   : > { %2245 = vmatpush3.bf16.msra.mxu1 %v2244_v12  ;;  %v2078_v25 = vld [vmem:[%s3088_s19] ss:$0 sm:$0xff]  ;;  %s2529_s18 = smov 112   ;;  %s2530_s27 = smov 104  }
  0x60   : > { %2246 = vmatprep.subr.bf16.mxu1 %v2521_v11  ;;  %s2531_s14 = smov 64   ;;  %s2532_s29 = smov 48  }
  0x61   : > { %s2533_s26 = smov 40   ;;  %s2534_s30 = smov 56  }
  0x62   : > { %s3089_s28 = sld [smem:[#allocation23_spill]]  ;;  %s2535_s23 = smov 8  }
  0x63   : > { %2248 = vmatpush3.bf16.msra.mxu1 %v2247_v15  ;;  %s2536_s19 = smov 16   ;;  %p2100_p11 = scmp.ne.s32.totalorder %s2502_s21, 1 }
  0x64   : > { %2162 = vmatprep.subr.mxu1 %v2523_v14  ;;  %s3093_s21 = sld [smem:[#allocation28_spill]] (!%p2100_p11) }
  0xea   : > { %v731_v3 = vpop.xlane.xlu0 %730 }
  0xeb   : > { %v733_v4 = vmul.f32 0.03125, %v731_v3 }
  0xed   : > { %v734_v5 = vsub.f32 %v2812_v1, %v733_v4 }
  0xef   : > { %v735_v6 = vmul.f32 %v734_v5, %v734_v5 }
  0xf1   : > { %v736_v7 = vsel %vm728_vm1, %v735_v6, 0.0 }
  0xf2   : > { %737 = vadd.xlane.f32.xlu0 %v736_v7 }
 0x17f   : > { %v738_v16 = vpop.xlane.xlu0 %737 }
 0x180   : > { %v739_v17 = vmul.f32 0.03125, %v738_v16 }
 0x182   : > { %v740_v18 = vadd.f32 1e-05, %v739_v17 }
 0x184   : > { %2368 = vrsqrt.f32 %v740_v18 }
 0x18e   : > { %v2369_v19 = vpop.eup %2368 }
 0x18f   : > { %v742_v21 = vmul.f32 %v2369_v19, %v734_v5 }
 0x191   : > { %v749_v23 = vmul.f32 %v2076_v20, %v742_v21 }
 0x193   : > { %v756_v24 = vadd.f32 %v2077_v22, %v749_v23 }
 0x195   : > { %2160 = vmatmul.mubr.msk.f32.vlgmr.msra.gmra.mrb[0].mxu1 %vm728_vm1, %v756_v24 }
 0x196   : > { %2164 = vmatprep.mubr.msk.f32.mxu1 %vm2522_vm2, %v2523_v14 }
 0x268   : > { %v833_v26 = vpop.f32.mrb[0].mxu1 }
 0x269   : > { %v2848_v27 = vadd.f32 %v2078_v25, %v833_v26  ;;  %v2161_v28 = vpop.f32.mrb[1].mxu1  ;;  %v1518_v26 = vld [vmem:[%s3089_s28] sm:$0xff] }
 0x26b   : > { %839 = vrot.lane.b32.xlu1 %v2848_v27, %s2524_s20  ;;  %v837_v29 = vmul.f32 0.35355338, %v2848_v27  ;;  %s2537_s20 = smov 24  }
 0x26d   : > { %1005 = vrot.lane.b32.xlu0 %v837_v29, %s2525_s25 }
 0x26f   : > { %1007 = vrot.lane.b32.xlu1 %v2848_v27, %s2526_s17 }
 0x273   : > { %1178 = vrot.lane.b32.xlu1 %v2848_v27, %s2527_s22  ;;  %s3090_s22 = scalar_lea.vmem %s3029_s6, %s2753_s12 }
 0x277   : > { %1349 = vrot.lane.b32.xlu1 %v2848_v27, %s2528_s15 }
 0x27b   : > { %1176 = vrot.lane.b32.xlu1 %v837_v29, %s2529_s18  ;;  %s3091_s18 = scalar_lea.vmem %s3030_s7, %s2753_s12 }
 0x27f   : > { %1347 = vrot.lane.b32.xlu1 %v837_v29, %s2530_s27 }
 0x2dd   : > { %v840_v30 = vpop.permute.xlu1 %839 }
 0x2de   : > { %2163 = vmatpush3.xpose.msk.msra.mxu1 %vm841_vm3, %v840_v30  ;;  %v1521_v30 = vld [vmem:[%s3089_s28 + $0x18] sm:$0xff] }
 0x2df   : > { %2167 = vmatprep.subr.mxu1 %v2523_v14  ;;  %v1006_v32 = vpop.permute.xlu0 %1005 }
 0x2e1   : > { %v1008_v31 = vpop.permute.xlu1 %1007  ;;  %2165 = vmatmul.mubr.msk.f32.vlgmr.msra.gmra.mrb[2].mxu1 %vm841_vm3, %v837_v29  ;;  %v1520_v29 = vld [vmem:[%s3089_s28 + $0x10] sm:$0xff] }
 0x2e2   : > { %2173 = vmatpush3.xpose.msk.msra.mxu0 %vm841_vm3, %v1008_v31  ;;  %2169 = vmatprep.mubr.msk.f32.mxu1 %vm2522_vm2, %v2523_v14  ;;  %v2253_v31 = vpack.c.bf16 %v1521_v30, %v1520_v29 }
 0x2e3   : > { %2182 = vmatprep.subr.mxu0 %v2523_v14 }
 0x2e5   : > { %v1179_v33 = vpop.permute.xlu1 %1178  ;;  %2175 = vmatmul.mubr.msk.f32.vlgmr.msra.gmra.mrb[0].mxu0 %vm841_vm3, %v1006_v32 }
 0x2e6   : > { %2183 = vmatpush3.xpose.msk.msra.mxu0 %vm841_vm3, %v1179_v33  ;;  %2184 = vmatprep.mubr.msk.f32.mxu0 %vm2522_vm2, %v2523_v14 }
 0x2e7   : > { %2192 = vmatprep.subr.mxu0 %v2523_v14 }
 0x2e9   : > { %v1350_v34 = vpop.permute.xlu1 %1349 }
 0x2ed   : > { %v1177_v35 = vpop.permute.xlu1 %1176 }
 0x2ee   : > { %2185 = vmatmul.mubr.msk.f32.vlgmr.msra.gmra.mrb[2].mxu0 %vm841_vm3, %v1177_v35 }
 0x2ef   : > { %2193 = vmatpush3.xpose.msk.msra.mxu0 %vm841_vm3, %v1350_v34  ;;  %2194 = vmatprep.mubr.msk.f32.mxu0 %vm2522_vm2, %v2523_v14 }
 0x2f0   : > { %2249 = vmatprep.subr.bf16.mxu0 %v2521_v11 }
 0x2f1   : > { %v1348_v36 = vpop.permute.xlu1 %1347 }
 0x2f2   : > { %2195 = vmatmul.mubr.msk.f32.vlgmr.msra.gmra.mrb[4].mxu0 %vm841_vm3, %v1348_v36 }
 0x2f3   : > { %2210 = vmatprep.mubr.msk.f32.mxu0 %vm2522_vm2, %v2523_v14 }
 0x3b4   : > { %v913_v37 = vpop.f32.mrb[2].mxu1 }
 0x3b5   : > { %v2166_v38 = vpop.f32.mrb[3].mxu1  ;;  %v917_v39 = vsel %vm841_vm3, %v913_v37, -inf }
 0x3b6   : > { %918 = vmax.xlane.f32.xlu1 %v917_v39 }
 0x3b8   : > { %v1079_v40 = vpop.f32.mrb[0].mxu0 }
 0x3b9   : > { %v2176_v41 = vpop.f32.mrb[1].mxu0  ;;  %v1083_v42 = vsel %vm841_vm3, %v1079_v40, -inf }
 0x3ba   : > { %1084 = vmax.xlane.f32.xlu0 %v1083_v42  ;;  %v2092_v42 = vld [vmem:[%s3090_s22] ss:$0 sm:$0xff] }
 0x3c1   : > { %v1250_v43 = vpop.f32.mrb[2].mxu0 }
 0x3c2   : > { %v2186_v44 = vpop.f32.mrb[3].mxu0  ;;  %v1254_v45 = vsel %vm841_vm3, %v1250_v43, -inf }
 0x3c3   : > { %1255 = vmax.xlane.f32.xlu1 %v1254_v45 }
 0x3c5   : > { %v1421_v46 = vpop.f32.mrb[4].mxu0 }
 0x3c6   : > { %v2196_v47 = vpop.f32.mrb[5].mxu0  ;;  %v1425_v48 = vsel %vm841_vm3, %v1421_v46, -inf }
 0x3c7   : > { %1426 = vmax.xlane.f32.xlu0 %v1425_v48 }
 0x3d4   : > { %928 = vrot.lane.b32.xlu1 %v2848_v27, %s2531_s14 }
 0x443   : > { %v919_v49 = vpop.xlane.xlu1 %918 }
 0x444   : > { %v920_v50 = vsub.f32 %v913_v37, %v919_v49 }
 0x446   : > { %v921_v51 = vmul.f32 1.442695, %v920_v50 }
 0x447   : > { %v1085_v52 = vpop.xlane.xlu0 %1084 }
 0x448   : > { %2370 = vpow2.f32 %v921_v51  ;;  %v1086_v53 = vsub.f32 %v1079_v40, %v1085_v52  ;;  %v1604_v52 = vld [vmem:[%s2793_s3] sm:$0xff] }
 0x44a   : > { %v1087_v54 = vmul.f32 1.442695, %v1086_v53  ;;  %v1605_v53 = vld [vmem:[%s2793_s3 + $0x8] sm:$0xff] }
 0x44c   : > { %2372 = vpow2.f32 %v1087_v54  ;;  %v2256_v54 = vpack.c.bf16 %v1605_v53, %v1604_v52 }
 0x450   : > { %v1256_v55 = vpop.xlane.xlu1 %1255 }
 0x451   : > { %v1257_v56 = vsub.f32 %v1250_v43, %v1256_v55  ;;  %v1607_v55 = vld [vmem:[%s2793_s3 + $0x18] sm:$0xff] }
 0x452   : > { %v2371_v57 = vpop.eup %2370 }
 0x453   : > { %v1258_v58 = vmul.f32 1.442695, %v1257_v56  ;;  %v923_v59 = vsel %vm841_vm3, %v2371_v57, 0.0 }
 0x454   : > { %v1427_v60 = vpop.xlane.xlu0 %1426  ;;  %924 = vadd.xlane.f32.xlu1 %v923_v59  ;;  %v929_v61 = vpop.permute.xlu1 %928  ;;  %v1610_v59 = vld [vmem:[%s2803_s13 + $0x10] sm:$0xff] }
 0x455   : > { %2374 = vpow2.f32 %v1258_v58  ;;  %v1428_v62 = vsub.f32 %v1421_v46, %v1427_v60  ;;  %2168 = vmatpush3.msra.mxu1 %v929_v61  ;;  %v1609_v58 = vld [vmem:[%s2803_s13 + $0x8] sm:$0xff]  ;;  %v1611_v61 = vld [vmem:[%s2803_s13 + $0x18] sm:$0xff] }
 0x456   : > { %v2373_v63 = vpop.eup %2372  ;;  %2177 = vmatprep.subr.mxu1 %v2523_v14 }
 0x457   : > { %v1429_v0 = vmul.f32 1.442695, %v1428_v62  ;;  %v1089_v2 = vsel %vm841_vm3, %v2373_v63, 0.0  ;;  %v2265_v62 = vpack.c.bf16 %v1611_v61, %v1610_v59 }
 0x458   : > { %1090 = vadd.xlane.f32.xlu0 %v1089_v2 }
 0x459   : > { %2376 = vpow2.f32 %v1429_v0  ;;  %v1613_v0 = vld [vmem:[%s2803_s13 + $0x28] sm:$0xff] }
 0x45f   : > { %v2375_v3 = vpop.eup %2374 }
 0x460   : > { %v1260_v4 = vsel %vm841_vm3, %v2375_v3, 0.0 }
 0x461   : > { %1261 = vadd.xlane.f32.xlu1 %v1260_v4 }
 0x463   : > { %v2377_v5 = vpop.eup %2376 }
 0x464   : > { %v1431_v6 = vsel %vm841_vm3, %v2377_v5, 0.0 }
 0x465   : > { %1432 = vadd.xlane.f32.xlu0 %v1431_v6 }
 0x472   : > { %1265 = vrot.lane.b32.xlu1 %v2848_v27, %s2532_s29 }
 0x476   : > { %1436 = vrot.lane.b32.xlu1 %v2848_v27, %s2533_s26 }
 0x47b   : > { %1094 = vrot.lane.b32.xlu0 %v2848_v27, %s2534_s30  ;;  %v1519_v27 = vld [vmem:[%s3089_s28 + $0x8] sm:$0xff] }
 0x47c   : > { %v2250_v28 = vpack.c.bf16 %v1519_v27, %v1518_v26 }
 0x47e   : > { %2251 = vmatpush3.bf16.msra.mxu0 %v2250_v28 }
 0x47f   : > { %2252 = vmatprep.subr.bf16.mxu0 %v2521_v11 }
 0x482   : > { %2254 = vmatpush3.bf16.msra.mxu0 %v2253_v31 }
 0x483   : > { %2261 = vmatprep.subr.bf16.mxu0 %v2521_v11 }
 0x4e1   : > { %v925_v7 = vpop.xlane.xlu1 %924 }
 0x4e2   : > { %2378 = vrcp.f32 %v925_v7  ;;  %v2094_v7 = vld [vmem:[%s3091_s18] ss:$0 sm:$0xff] }
 0x4e5   : > { %v1091_v8 = vpop.xlane.xlu0 %1090 }
 0x4e6   : > { %2380 = vrcp.f32 %v1091_v8 }
 0x4ec   : > { %v2379_v9 = vpop.eup %2378 }
 0x4ed   : > { %v927_v10 = vmul.f32 %v2379_v9, %v2371_v57  ;;  %v1608_v57 = vld [vmem:[%s2803_s13] sm:$0xff] }
 0x4ee   : > { %v1262_v12 = vpop.xlane.xlu1 %1261  ;;  %v2262_v60 = vpack.c.bf16 %v1609_v58, %v1608_v57  ;;  %v2095_v9 = vld [vmem:[%s697_s24] ss:$0 sm:$0xff] }
 0x4ef   : > { %2382 = vrcp.f32 %v1262_v12  ;;  %2170 = vmatmul.mubr.msk.f32.vlgmr.msra.gmra.mrb[4].mxu1 %vm841_vm3, %v927_v10  ;;  %v1614_v12 = vld [vmem:[%s2803_s13 + $0x30] sm:$0xff] }
 0x4f0   : > { %2179 = vmatprep.mubr.msk.f32.mxu1 %vm2522_vm2, %v2523_v14  ;;  %v2381_v15 = vpop.eup %2380 }
 0x4f1   : > { %v1093_v16 = vmul.f32 %v2381_v15, %v2373_v63  ;;  %v1612_v63 = vld [vmem:[%s2803_s13 + $0x20] sm:$0xff] }
 0x4f2   : > { %v1433_v13 = vpop.xlane.xlu0 %1432  ;;  %v1266_v17 = vpop.permute.xlu1 %1265  ;;  %v2268_v2 = vpack.c.bf16 %v1613_v0, %v1612_v63 }
 0x4f3   : > { %2384 = vrcp.f32 %v1433_v13  ;;  %v1615_v13 = vld [vmem:[%s2803_s13 + $0x38] sm:$0xff] }
 0x4f4   : > { %v2271_v15 = vpack.c.bf16 %v1615_v13, %v1614_v12 }
 0x4f6   : > { %v1095_v18 = vpop.permute.xlu0 %1094  ;;  %v1437_v21 = vpop.permute.xlu1 %1436 }
 0x4f7   : > { %2178 = vmatpush3.msra.mxu1 %v1095_v18 }
 0x4f8   : > { %2180 = vmatmul.mubr.msk.f32.vlgmr.msra.gmra.mrb[6].mxu1 %vm841_vm3, %v1093_v16  ;;  %2187 = vmatprep.subr.mxu1 %v2523_v14  ;;  %v2096_v16 = vld [vmem:[%s705_s5] ss:$0 sm:$0xff] }
 0x4f9   : > { %v2383_v19 = vpop.eup %2382  ;;  %2188 = vmatpush3.msra.mxu1 %v1266_v17  ;;  %2189 = vmatprep.mubr.msk.f32.mxu1 %vm2522_vm2, %v2523_v14 }
 0x4fa   : > { %v1264_v20 = vmul.f32 %v2383_v19, %v2375_v3  ;;  %2197 = vmatprep.subr.mxu1 %v2523_v14 }
 0x4fc   : > { %2190 = vmatmul.mubr.msk.f32.vlgmr.msra.gmra.mrb[8].mxu1 %vm841_vm3, %v1264_v20 }
 0x4fd   : > { %v2385_v22 = vpop.eup %2384  ;;  %2198 = vmatpush3.msra.mxu1 %v1437_v21  ;;  %2199 = vmatprep.mubr.msk.f32.mxu1 %vm2522_vm2, %v2523_v14  ;;  %v2098_v21 = vld [vmem:[%s713_s0] ss:$0 sm:$0xff] }
 0x4fe   : > { %v1435_v23 = vmul.f32 %v2385_v22, %v2377_v5  ;;  %2255 = vmatprep.subr.bf16.mxu1 %v2521_v11 }
 0x500   : > { %2200 = vmatmul.mubr.msk.f32.vlgmr.msra.gmra.mrb[10].mxu1 %vm841_vm3, %v1435_v23 }
 0x501   : > { %2221 = vmatprep.mubr.msk.f32.mxu1 %vm2522_vm2, %v2523_v14  ;;  %2257 = vmatpush3.bf16.msra.mxu1 %v2256_v54 }
 0x502   : > { %2258 = vmatprep.subr.bf16.mxu1 %v2521_v11 }
 0x5c2   : > { %v1000_v24 = vpop.f32.mrb[4].mxu1 }
 0x5c3   : > { %1004 = vst.msk [vmem:[#allocation3] sm:$0xff] %vm841_vm3, %v1000_v24  ;;  %v2171_v25 = vpop.f32.mrb[5].mxu1 }
 0x5cb   : > { %v1166_v32 = vpop.f32.mrb[6].mxu1 }
 0x5cc   : > { %1171 = vrot.lane.b32.xlu0 %v1166_v32, %s2535_s23  ;;  %v2181_v33 = vpop.f32.mrb[7].mxu1  ;;  %s3094_s23 = sld [smem:[#allocation29_spill]] (!%p2100_p11) }
 0x5cf   : > { %v1337_v34 = vpop.f32.mrb[8].mxu1 }
 0x5d0   : > { %1342 = vrot.lane.b32.xlu1 %v1337_v34, %s2536_s19  ;;  %v2191_v35 = vpop.f32.mrb[9].mxu1 }
 0x5d3   : > { %v1508_v36 = vpop.f32.mrb[10].mxu1 }
 0x5d4   : > { %1513 = vrot.lane.b32.xlu0 %v1508_v36, %s2537_s20  ;;  %v2201_v37 = vpop.f32.mrb[11].mxu1  ;;  %v2101_v36 = vld [vmem:[%s3093_s21] ss:$0 sm:$0xff] (!%p2100_p11) }
 0x63e   : > { %v1172_v38 = vpop.permute.xlu0 %1171 }
 0x63f   : > { %1175 = vst.msk [vmem:[#allocation3] sm:$0xff] %vm1174_vm4, %v1172_v38  ;;  %v2102_v38 = vld [vmem:[%s3094_s23] ss:$0 sm:$0xff] (!%p2100_p11) }
 0x642   : > { %v1343_v39 = vpop.permute.xlu1 %1342 }
 0x643   : > { %1346 = vst.msk [vmem:[#allocation3] sm:$0xff] %vm1345_vm5, %v1343_v39 }
 0x646   : > { %v1514_v40 = vpop.permute.xlu0 %1513 }
 0x647   : > { %1517 = vst.msk [vmem:[#allocation3] sm:$0xff] %vm1516_vm6, %v1514_v40 }
 0x64e   : > { %v1522_v41 = vld [vmem:[#allocation3] sm:$0xff] }
 0x64f   : > { %2211 = vmatmul.mubr.msk.f32.vlgmr.msra.gmra.mrb[6].mxu0 %vm728_vm1, %v1522_v41 }
 0x650   : > { %2240 = vmatprep.mubr.msk.f32.mxu0 %vm2522_vm2, %v2523_v14  ;;  %2263 = vmatpush3.bf16.msra.mxu0 %v2262_v60 }
 0x651   : > { %2264 = vmatprep.subr.bf16.mxu0 %v2521_v11 }
 0x654   : > { %2266 = vmatpush3.bf16.msra.mxu0 %v2265_v62 }
 0x655   : > { %2267 = vmatprep.subr.bf16.mxu0 %v2521_v11 }
 0x658   : > { %2269 = vmatpush3.bf16.msra.mxu0 %v2268_v2 }
 0x659   : > { %2270 = vmatprep.subr.bf16.mxu0 %v2521_v11 }
 0x65c   : > { %2272 = vmatpush3.bf16.msra.mxu0 %v2271_v15 }
 0x722   : > { %v1599_v43 = vpop.f32.mrb[6].mxu0 }
 0x723   : > { %v1600_v44 = vadd.f32 %v2092_v42, %v1599_v43  ;;  %v2212_v45 = vpop.f32.mrb[7].mxu0 }
 0x725   : > { %v1603_v46 = vadd.f32 %v1600_v44, %v2812_v1  ;;  %v1606_v1 = vld [vmem:[%s2793_s3 + $0x10] sm:$0xff] }
 0x726   : > { %v2259_v56 = vpack.c.bf16 %v1607_v55, %v1606_v1 }
 0x727   : > { %v1618_v47 = vsel %vm728_vm1, %v1603_v46, 0.0 }
 0x728   : > { %1619 = vadd.xlane.f32.xlu1 %v1618_v47  ;;  %2260 = vmatpush3.bf16.msra.mxu1 %v2259_v56 }
 0x7b5   : > { %v1620_v48 = vpop.xlane.xlu1 %1619 }
 0x7b6   : > { %v1621_v49 = vmul.f32 0.03125, %v1620_v48 }
 0x7b8   : > { %v1622_v14 = vsub.f32 %v1603_v46, %v1621_v49 }
 0x7ba   : > { %v1623_v50 = vmul.f32 %v1622_v14, %v1622_v14 }
 0x7bc   : > { %v1624_v51 = vsel %vm728_vm1, %v1623_v50, 0.0 }
 0x7bd   : > { %1625 = vadd.xlane.f32.xlu0 %v1624_v51 }
 0x84a   : > { %v1626_v3 = vpop.xlane.xlu0 %1625 }
 0x84b   : > { %v1627_v4 = vmul.f32 0.03125, %v1626_v3 }
 0x84d   : > { %v1628_v5 = vadd.f32 1e-05, %v1627_v4 }
 0x84f   : > { %2386 = vrsqrt.f32 %v1628_v5 }
 0x859   : > { %v2387_v6 = vpop.eup %2386 }
 0x85a   : > { %v1630_v8 = vmul.f32 %v2387_v6, %v1622_v14 }
 0x85c   : > { %v1637_v10 = vmul.f32 %v2094_v7, %v1630_v8 }
 0x85e   : > { %v1644_v11 = vadd.f32 %v2095_v9, %v1637_v10 }
 0x860   : > { %2222 = vmatmul.mubr.msk.f32.vlgmr.msra.gmra.mrb[12].mxu1 %vm728_vm1, %v1644_v11 }
 0x933   : > { %v1721_v17 = vpop.f32.mrb[12].mxu1 }
 0x934   : > { %v1722_v18 = vadd.f32 %v2096_v16, %v1721_v17  ;;  %v2223_v19 = vpop.f32.mrb[13].mxu1 }
 0x936   : > { %v1725_v20 = vmax.f32 %v1722_v18, 0.0 }
 0x938   : > { %2241 = vmatmul.mubr.msk.f32.vlgmr.msra.gmra.mrb[8].mxu0 %vm1733_vm7, %v1725_v20 }
 0xa0a   : > { %1812 = sbr.rel (%p2100_p11) target bundleno = 2890 (0xb4a), region = 92 }
 0xa0b   : > { %v1803_v22 = vpop.f32.mrb[8].mxu0 }
 0xa0c   : > { %v1804_v23 = vadd.f32 %v2098_v21, %v1803_v22  ;;  %v2242_v24 = vpop.f32.mrb[9].mxu0 }
 0xa0e   : > { %v1807_v25 = vadd.f32 %v1804_v23, %v1603_v46 }
 0xa10   : > { %1808 = vst.msk [vmem:[#allocation2] sm:$0xff] %vm728_vm1, %v1807_v25  ;;  %v1815_v26 = vsel (!%p2100_p11), %vm728_vm1, %v1807_v25, 0.0 }
 0xa11   : > { %1816 = vadd.xlane.f32.xlu0 %v1815_v26 }
 0xa9e   : > { %v1817_v27 = vpop.xlane.xlu0 %1816 }
 0xa9f   : > { %v1818_v28 = vmul.f32 0.03125, %v1817_v27 }
 0xaa1   : > { %v1819_v29 = vsub.f32 %v1807_v25, %v1818_v28 }
 0xaa3   : > { %v1820_v30 = vmul.f32 %v1819_v29, %v1819_v29 }
 0xaa5   : > { %v1821_v31 = vsel %vm728_vm1, %v1820_v30, 0.0 }
 0xaa6   : > { %1822 = vadd.xlane.f32.xlu0 %v1821_v31 }
 0xb33   : > { %v1823_v32 = vpop.xlane.xlu0 %1822 }
 0xb34   : > { %v1824_v33 = vmul.f32 0.03125, %v1823_v32 }
 0xb36   : > { %v1825_v34 = vadd.f32 1e-05, %v1824_v33 }
 0xb38   : > { %2388 = vrsqrt.f32 %v1825_v34 }
 0xb42   : > { %v2389_v35 = vpop.eup %2388 }
 0xb43   : > { %v1827_v37 = vmul.f32 %v2389_v35, %v1819_v29 }
 0xb45   : > { %v1834_v39 = vmul.f32 %v2101_v36, %v1827_v37 }
 0xb47   : > { %v1841_v40 = vadd.f32 %v2102_v38, %v1834_v39 }
 0xb49   : > { %1842 = vst.msk [vmem:[%s2809_s16] sm:$0xff] %vm728_vm1, %v1841_v40 }
 0xb4a PF: > { %s3095_s19 = sld [smem:[#allocation13_spill]]  ;;  %s3096_s20 = sld [smem:[#allocation22_spill]] }
 0xb4b   : > { %s3097_s25 = sld [smem:[#allocation19_spill]]  ;;  %s3098_s15 = sld [smem:[#allocation30_spill]] }
 0xb4c   : > { %s1857_s27 = sshll.u32 %s2809_s16, 4  ;;  %s2538_s26 = smov [#allocation7]   ;;  %s1858_s27 = int_to_ptr.vmem [resolvable:$true] %s1857_s27 }
 0xb4d   : > { %s2420_s29 = scalar_lea.vmem %s1858_s27, 128  ;;  %s2424_s24 = sshll.u32 %s2538_s26, 4  ;;  %s2425_s24 = int_to_ptr.vmem [resolvable:$false] %s2424_s24 }
 0xb4e   : > { %p2421_p0 = scmp.ne.s32.totalorder %s1858_s27, %s2420_s29  ;;  %s2426_s30 = scalar_lea.vmem %s2425_s24, 256 }
 0xb4f   : > { %p2427_p6 = scmp.lt.s32.totalorder %s1858_s27, %s2425_s24  ;;  %p2428_p3 = scmp.lt.s32.totalorder %s2426_s30, %s2420_s29 }
 0xb50   : > { %s2104_s17 = sshll.u32 %s3095_s19, 7  ;;  %s1844_s14 = scalar_lea.sflag [#allocation6], %s3096_s20 }
 0xb51   : > { %s2974_s18 = scalar_lea.hbm %s3098_s15, %s2104_s17  ;;  %p3099_p7 = scmp.ne.s32.totalorder %s3097_s25, 0 }
 0xb52   : > { %p2429_p8 = por %p2428_p3, %p2427_p6 }
 0xb53   : > { %p2422_p13 = pnand %p2421_p0, %p3099_p7 }
 0xb55   : > { %p2423_p4 = pneg %p2422_p13 }
 0xb57   : > { %p2430_p12 = pnand %p2429_p8, %p2423_p4 }
 0xb59   : > { %2433 = shalt.err (!%p2430_p12)
}
 0xb5a   : > { %s2434_s16 = scalar_lea.hbm %s2974_s18, 128  ;;  %s2438_s12 = scalar_lea.hbm %s3098_s15, 256 }
 0xb5b   : > { %p2435_p1 = scmp.ne.s32.totalorder %s2974_s18, %s2434_s16  ;;  %p2439_p10 = scmp.lt.u32.totalorder %s2974_s18, %s3098_s15 }
 0xb5c   : > { %p2440_p9 = scmp.lt.u32.totalorder %s2438_s12, %s2434_s16  ;;  %p2442_p0 = scmp.lt.u32.totalorder %s2434_s16, %s2974_s18 }
 0xb5d   : > { %p2436_p2 = pnand %p2435_p1, %p3099_p7 }
 0xb5e   : > { %p2441_p11 = por %p2440_p9, %p2439_p10 }
 0xb5f   : > { %p2437_p5 = pneg %p2436_p2 }
 0xb60   : > { %p2443_p13 = por %p2442_p0, %p2441_p11 }
 0xb62   : > { %p2444_p4 = pnand %p2443_p13, %p2437_p5 }
 0xb64   : > { %2447 = shalt.err (!%p2444_p4)
}
 0xb65   : > { %2275 = dma.vmem_to_hbm [thread:$0]  (%p3099_p7), %s1858_s27, 128, %s2974_s18, %s1844_s14  }
 0xb66 PF: > { %s3100_s0 = sld [smem:[#allocation16_spill]]  ;;  %s3101_s23 = sld [smem:[#allocation10_spill]] }
 0xb67   : > { %s3102_s19 = sld [smem:[#allocation20_spill]] }
 0xb6c   : > { %p2286_p6 = scmp.ge.s32.totalorder %s3100_s0, 2  ;;  %s1869_s20 = sand.u32 1, %s3101_s23  }
 0xb6d   : > { %p3103_p3 = scmp.ne.s32.totalorder %s3102_s19, 0  ;;  %s1870_s17 = scalar_lea.sflag [#allocation6], %s1869_s20 }
 0xb6f   : > { %p2282_p8 = pnand %p2286_p6, %p3103_p3 }
 0xb71   : > { %2485 = dma.done.wait (!%p2282_p8), %s1870_s17, 128  }
 0xb72   : > { %2487 = vsyncadd (!%p2282_p8), %s1870_s17, 4294967168  ;;  %s31_s25 = sadd.s32 1, %s3100_s0   ;;  %s3104_s18 = sld [smem:[#allocation11_spill]] }
 0xb73   : > { %p28_p12 = scmp.ge.s32.totalorder %s31_s25, 6   ;;  %s3105_s19 = sld [smem:[#allocation12_spill]] }
 0xb74   : > { %s3106_s20 = sld [smem:[#allocation21_spill]]  ;;  %s3107_s21 = sld [smem:[#allocation14_spill]] }
 0xb75   : > { %s3108_s22 = sld [smem:[#allocation15_spill]]  ;;  %s3109_s23 = sld [smem:[#allocation17_spill]] }
 0xb76   : > { %s3110_s24 = sld [smem:[#allocation18_spill]]  ;;  %30 = sbr.rel (!%p28_p12) target bundleno = 15 (0xf), region = 169 }
 0xb7d   :  { %1875 = vsyncpa [#allocation5], 1 }
 0xb7e   :  { %1877 = vsyncpa [#allocation5 + $0x1], 1 }
 0xb7f   :  { %1878 = vsyncpa [#allocation6], 1 }
 0xb80   :  { %1880 = vsyncpa [#allocation6 + $0x1], 1 }

</bundles_post_ra>
